<compile_context>
chip_gen: v5e
topology: v5e:2x2
jax: 0.10.0
libtpu: 0.0.40
codegen_flags: <defaults>
</compile_context>

<pallas_src>
import jax
import jax.numpy as jnp
from jax.experimental import pallas as pl
from jax.experimental.pallas import tpu as pltpu

# ---- small BERT config ------------------------------------------------------
B, S, H = 2, 8, 32
N_HEADS = 2
D_HEAD = H // N_HEADS
INTER = 64
N_LAYERS = 2
VOCAB = 32          # config.vocab_num (after resize_token_embeddings)
TYPE_VOCAB = 2
MAX_POS = 16
LN_EPS = 1e-12

# ---- packed-slab column offsets ---------------------------------------------
# per-layer bias / LayerNorm vector slab: (N_LAYERS, LVEC) f32
_BQKV = 0
_BO = _BQKV + 3 * H       # 96
_LN1G = _BO + H           # 128
_LN1B = _LN1G + H         # 160
_BI = _LN1B + H           # 192
_BF = _BI + INTER         # 256
_LN2G = _BF + H           # 288
_LN2B = _LN2G + H         # 320
LVEC = _LN2B + H          # 352

# per-layer big-weight slab: (N_LAYERS, H, WCOLS) bf16  (wqkv | wo | wi)
_WQKV = 0
_WO = 3 * H               # 96
_WI = _WO + H             # 128
WCOLS = _WI + INTER       # 192


# ---- fused encoder kernel (one grid step == one batch element) --------------
def _bert_kernel(emb_ref, bias_ref, gvec_ref, lvec_ref,
                 wslab_ref, wf_ref, pool_w_ref,
                 h_out_ref, pool_out_ref):
    f32, bf16 = jnp.float32, jnp.bfloat16

    def layernorm(x, g, b):
        mu = jnp.mean(x, axis=-1, keepdims=True)
        xc = x - mu
        var = jnp.mean(xc * xc, axis=-1, keepdims=True)
        return xc * jax.lax.rsqrt(var + LN_EPS) * g + b

    def erf(x):
        # Abramowitz & Stegun 7.1.26 polynomial, |err| < 1.5e-7 (exp + VPU only).
        t = 1.0 / (1.0 + 0.3275911 * jnp.abs(x))
        poly = ((((1.061405429 * t - 1.453152027) * t + 1.421413741) * t
                 - 0.284496736) * t + 0.254829592) * t
        y = 1.0 - poly * jnp.exp(-x * x)
        return jnp.where(x >= 0.0, y, -y)

    def gelu(x):                      # erf-based GELU (matches HF BERT)
        return 0.5 * x * (1.0 + erf(x * 0.7071067811865476))

    def mm(x, w_bf16):                # bf16 MXU matmul, f32 accumulation
        return jnp.dot(x.astype(bf16), w_bf16, preferred_element_type=f32)

    bias = bias_ref[...]              # (1, 1, S) f32, broadcasts over heads/rows
    scale = 1.0 / (D_HEAD ** 0.5)

    # embeddings: LayerNorm(word + pos + type)
    h = layernorm(emb_ref[...], gvec_ref[0:1, :], gvec_ref[1:2, :])   # (S, H)

    for l in range(N_LAYERS):                                         # unrolled
        # ---- fused QKV projection: one (S, H) x (H, 3H) matmul ----
        qkv = mm(h, wslab_ref[l, :, _WQKV:_WO]) + lvec_ref[l:l + 1, _BQKV:_BO]
        qkv_bf = qkv.astype(bf16)                                      # (S, 3H)

        # ---- head split, registers only -> (N_HEADS, S, D_HEAD) ----
        q3 = jnp.stack([qkv_bf[:, 0 * H + j * D_HEAD:0 * H + (j + 1) * D_HEAD]
                        for j in range(N_HEADS)], axis=0)
        k3 = jnp.stack([qkv_bf[:, 1 * H + j * D_HEAD:1 * H + (j + 1) * D_HEAD]
                        for j in range(N_HEADS)], axis=0)
        v3 = jnp.stack([qkv_bf[:, 2 * H + j * D_HEAD:2 * H + (j + 1) * D_HEAD]
                        for j in range(N_HEADS)], axis=0)

        # ---- batched attention over the head axis ----
        s = jax.lax.dot_general(q3, k3, (((2,), (2,)), ((0,), (0,))),
                                preferred_element_type=f32) * scale   # (NH,S,S)
        s = s + bias                                                   # f32 mask
        s = s - jnp.max(s, axis=-1, keepdims=True)
        p = jnp.exp(s)
        p = p * pl.reciprocal(jnp.sum(p, axis=-1, keepdims=True), approx=True)
        ctx3 = jax.lax.dot_general(p.astype(bf16), v3,
                                   (((2,), (1,)), ((0,), (0,))),
                                   preferred_element_type=f32)         # (NH,S,Dh)

        # ---- merge heads in registers -> (S, H) ----
        ctx = jnp.concatenate([ctx3[j] for j in range(N_HEADS)], axis=-1)

        # ---- attention output projection + residual + LayerNorm ----
        attn = mm(ctx, wslab_ref[l, :, _WO:_WI]) + lvec_ref[l:l + 1, _BO:_LN1G]
        h = layernorm(h + attn, lvec_ref[l:l + 1, _LN1G:_LN1B],
                      lvec_ref[l:l + 1, _LN1B:_BI])

        # ---- FFN (erf-GELU) + residual + LayerNorm ----
        inter = gelu(mm(h, wslab_ref[l, :, _WI:WCOLS])
                     + lvec_ref[l:l + 1, _BI:_BF])
        ffn = mm(inter, wf_ref[l]) + lvec_ref[l:l + 1, _BF:_LN2G]
        h = layernorm(h + ffn, lvec_ref[l:l + 1, _LN2G:_LN2B],
                      lvec_ref[l:l + 1, _LN2B:LVEC])

    # ---- outputs: last hidden state + pooler (tanh(CLS @ Wp + bp)) ----
    h_out_ref[...] = h
    cls = h[0:1, :]                                   # CLS row, register value
    pool_out_ref[0] = jnp.tanh(mm(cls, pool_w_ref[...]) + gvec_ref[2:3, :])


# ---- parameter packing (few, large DMAs) ------------------------------------
def _pack_params(params):
    gvec = jnp.concatenate([params["emb_ln_g"], params["emb_ln_b"],
                            params["pool_b"]], axis=0)                  # (3, H)
    lvec = jnp.concatenate([params["bqkv"], params["bo"],
                            params["ln1_g"], params["ln1_b"],
                            params["bi"], params["bf"],
                            params["ln2_g"], params["ln2_b"]], axis=-1)  # (L,352)
    wslab = jnp.concatenate([params["wqkv"], params["wo"], params["wi"]],
                            axis=-1).astype(jnp.bfloat16)               # (L,H,192)
    wf = params["wf"].astype(jnp.bfloat16)                              # (L,64,H)
    pool_w = params["pool_w"].astype(jnp.bfloat16)                      # (H, H)
    return gvec, lvec, wslab, wf, pool_w


def bert_encoder_forward(params, input_ids, segs):
    # attention_mask = inputs > 0 (same as the PyTorch module)
    mask = (input_ids > 0).astype(jnp.float32)                  # (B, S)
    bias = ((1.0 - mask) * -1e9)[:, None, :]                    # (B, 1, S)

    # TODO(synk): embedding-table gathers (dynamic row lookups) stay in XLA;
    # everything downstream runs in the single Pallas kernel.
    we = jnp.take(params["word_emb"], input_ids, axis=0)        # (B, S, H)
    pe = jnp.broadcast_to(params["pos_emb"][:S][None, :, :], (B, S, H))
    te = jnp.take(params["type_emb"], segs, axis=0)             # (B, S, H)
    emb = (we + pe + te).reshape(B * S, H)

    gvec, lvec, wslab, wf, pool_w = _pack_params(params)

    h_flat, pooled = pl.pallas_call(
        _bert_kernel,
        out_shape=(jax.ShapeDtypeStruct((B * S, H), jnp.float32),
                   jax.ShapeDtypeStruct((B, 1, H), jnp.float32)),
        grid=(B,),
        in_specs=[
            pl.BlockSpec((S, H), lambda b: (b, 0)),                    # emb
            pl.BlockSpec((1, 1, S), lambda b: (b, 0, 0)),              # mask bias
            pl.BlockSpec((3, H), lambda b: (0, 0)),                    # gvec slab
            pl.BlockSpec((N_LAYERS, LVEC), lambda b: (0, 0)),          # lvec slab
            pl.BlockSpec((N_LAYERS, H, WCOLS), lambda b: (0, 0, 0)),   # wqkv|wo|wi
            pl.BlockSpec((N_LAYERS, INTER, H), lambda b: (0, 0, 0)),   # wf
            pl.BlockSpec((H, H), lambda b: (0, 0)),                    # pooler W
        ],
        out_specs=(pl.BlockSpec((S, H), lambda b: (b, 0)),
                   pl.BlockSpec((1, 1, H), lambda b: (b, 0, 0))),
        compiler_params=pltpu.CompilerParams(
            dimension_semantics=("parallel",)),
    )(emb, bias, gvec, lvec, wslab, wf, pool_w)

    return h_flat.reshape(B, S, H), pooled.reshape(B, H)


# ---- parameter init (deterministic, synthetic) ------------------------------
def init_params(key):
    keys = iter(jax.random.split(key, 16))

    def nrm(shape):
        return jax.random.normal(next(keys), shape, jnp.float32) * 0.02

    return {
        "word_emb": nrm((VOCAB, H)),
        "pos_emb": nrm((MAX_POS, H)),
        "type_emb": nrm((TYPE_VOCAB, H)),
        "emb_ln_g": jnp.ones((1, H), jnp.float32),
        "emb_ln_b": jnp.zeros((1, H), jnp.float32),
        "pool_w": nrm((H, H)),
        "pool_b": jnp.zeros((1, H), jnp.float32),
        # per-layer weights stacked on a leading layer axis; QKV fused to (H, 3H)
        "wqkv": nrm((N_LAYERS, H, 3 * H)),
        "bqkv": jnp.zeros((N_LAYERS, 3 * H), jnp.float32),
        "wo": nrm((N_LAYERS, H, H)),
        "bo": jnp.zeros((N_LAYERS, H), jnp.float32),
        "ln1_g": jnp.ones((N_LAYERS, H), jnp.float32),
        "ln1_b": jnp.zeros((N_LAYERS, H), jnp.float32),
        "wi": nrm((N_LAYERS, H, INTER)),
        "bi": jnp.zeros((N_LAYERS, INTER), jnp.float32),
        "wf": nrm((N_LAYERS, INTER, H)),
        "bf": jnp.zeros((N_LAYERS, H), jnp.float32),
        "ln2_g": jnp.ones((N_LAYERS, H), jnp.float32),
        "ln2_b": jnp.zeros((N_LAYERS, H), jnp.float32),
    }


# ---- driver ------------------------------------------------------------------
if __name__ == "__main__":
    key = jax.random.PRNGKey(0)
    pkey, ikey = jax.random.split(key)
    params = init_params(pkey)

    input_ids = jax.random.randint(ikey, (B, S), 1, VOCAB, dtype=jnp.int32)
    input_ids = input_ids.at[:, -2:].set(0)   # trailing padding -> mask = 0
    segs = jnp.concatenate(
        [jnp.zeros((B, S // 2), jnp.int32), jnp.ones((B, S // 2), jnp.int32)],
        axis=1)

    h, pooler = bert_encoder_forward(params, input_ids, segs)
    jax.block_until_ready((h, pooler))

    assert h.shape == (B, S, H) and h.dtype == jnp.float32
    assert pooler.shape == (B, H) and pooler.dtype == jnp.float32
    assert bool(jnp.all(jnp.isfinite(h))) and bool(jnp.all(jnp.isfinite(pooler)))
    print("KERNEL_OK")
</pallas_src>

<mosaic_0001>
module attributes {stable_mosaic.version = 11 : i64} {
  func.func @_bert_kernel(%arg0: i32, %arg1: memref<8x32xf32, #tpu.memory_space<vmem>>, %arg2: memref<1x1x8xf32, #tpu.memory_space<vmem>>, %arg3: memref<3x32xf32, #tpu.memory_space<vmem>>, %arg4: memref<2x352xf32, #tpu.memory_space<vmem>>, %arg5: memref<2x32x192xbf16, #tpu.memory_space<vmem>>, %arg6: memref<2x64x32xbf16, #tpu.memory_space<vmem>>, %arg7: memref<32x32xbf16, #tpu.memory_space<vmem>>, %arg8: memref<8x32xf32, #tpu.memory_space<vmem>>, %arg9: memref<1x1x32xf32, #tpu.memory_space<vmem>>) attributes {dimension_semantics = [#tpu.dimension_semantics<parallel>], iteration_bounds = array<i64: 2>, scalar_prefetch = 0 : i64, scratch_operands = 0 : i64, tpu.core_type = #tpu.core_type<tc>, window_params = [{transform_indices = @transform_0, window_bounds = array<i64: 8, 32>}, {transform_indices = @transform_1, window_bounds = array<i64: 1, 1, 8>}, {pipeline_mode = #tpu.pipeline_mode<synchronous>, transform_indices = @transform_2, window_bounds = array<i64: 3, 32>}, {pipeline_mode = #tpu.pipeline_mode<synchronous>, transform_indices = @transform_3, window_bounds = array<i64: 2, 352>}, {pipeline_mode = #tpu.pipeline_mode<synchronous>, transform_indices = @transform_4, window_bounds = array<i64: 2, 32, 192>}, {pipeline_mode = #tpu.pipeline_mode<synchronous>, transform_indices = @transform_5, window_bounds = array<i64: 2, 64, 32>}, {pipeline_mode = #tpu.pipeline_mode<synchronous>, transform_indices = @transform_6, window_bounds = array<i64: 32, 32>}, {transform_indices = @transform_7, window_bounds = array<i64: 8, 32>}, {transform_indices = @transform_8, window_bounds = array<i64: 1, 1, 32>}]} {
    %c0 = arith.constant 0 : index
    %c0_0 = arith.constant 0 : index
    %c0_1 = arith.constant 0 : index
    %0 = vector.load %arg2[%c0, %c0_0, %c0_1] : memref<1x1x8xf32, #tpu.memory_space<vmem>>, vector<1x1x8xf32>
    %c0_2 = arith.constant 0 : index
    %c0_3 = arith.constant 0 : index
    %1 = vector.load %arg1[%c0_2, %c0_3] : memref<8x32xf32, #tpu.memory_space<vmem>>, vector<8x32xf32>
    %c0_4 = arith.constant 0 : index
    %c0_5 = arith.constant 0 : index
    %2 = vector.load %arg3[%c0_4, %c0_5] : memref<3x32xf32, #tpu.memory_space<vmem>>, vector<1x32xf32>
    %c1 = arith.constant 1 : index
    %c0_6 = arith.constant 0 : index
    %3 = vector.load %arg3[%c1, %c0_6] : memref<3x32xf32, #tpu.memory_space<vmem>>, vector<1x32xf32>
    %cst = arith.constant dense<0.000000e+00> : vector<8xf32>
    %4 = vector.multi_reduction <add>, %1, %cst [1] : vector<8x32xf32> to vector<8xf32>
    %5 = vector.shape_cast %4 : vector<8xf32> to vector<8x1xf32>
    %cst_7 = arith.constant 3.200000e+01 : f32
    %6 = vector.broadcast %cst_7 : f32 to vector<8x1xf32>
    %7 = arith.divf %5, %6 : vector<8x1xf32>
    %8 = vector.broadcast %7 : vector<8x1xf32> to vector<8x32xf32>
    %9 = arith.subf %1, %8 : vector<8x32xf32>
    %10 = arith.mulf %9, %9 : vector<8x32xf32>
    %cst_8 = arith.constant dense<0.000000e+00> : vector<8xf32>
    %11 = vector.multi_reduction <add>, %10, %cst_8 [1] : vector<8x32xf32> to vector<8xf32>
    %12 = vector.shape_cast %11 : vector<8xf32> to vector<8x1xf32>
    %cst_9 = arith.constant 3.200000e+01 : f32
    %13 = vector.broadcast %cst_9 : f32 to vector<8x1xf32>
    %14 = arith.divf %12, %13 : vector<8x1xf32>
    %cst_10 = arith.constant 9.99999996E-13 : f32
    %15 = vector.broadcast %cst_10 : f32 to vector<8x1xf32>
    %16 = arith.addf %14, %15 : vector<8x1xf32>
    %17 = math.rsqrt %16 : vector<8x1xf32>
    %18 = vector.broadcast %17 : vector<8x1xf32> to vector<8x32xf32>
    %19 = arith.mulf %9, %18 : vector<8x32xf32>
    %20 = vector.broadcast %2 : vector<1x32xf32> to vector<8x32xf32>
    %21 = arith.mulf %19, %20 : vector<8x32xf32>
    %22 = vector.broadcast %3 : vector<1x32xf32> to vector<8x32xf32>
    %23 = arith.addf %21, %22 : vector<8x32xf32>
    %c0_11 = arith.constant 0 : index
    %c0_12 = arith.constant 0 : index
    %c0_13 = arith.constant 0 : index
    %24 = vector.load %arg5[%c0_11, %c0_12, %c0_13] : memref<2x32x192xbf16, #tpu.memory_space<vmem>>, vector<1x32x96xbf16>
    %25 = vector.shape_cast %24 : vector<1x32x96xbf16> to vector<32x96xbf16>
    %26 = arith.truncf %23 : vector<8x32xf32> to vector<8x32xbf16>
    %cst_14 = arith.constant dense<0.000000e+00> : vector<8x96xf32>
    %27 = tpu.matmul %26, %25, %cst_14 {dimension_numbers = #tpu.dot_dimension_numbers<[1], [0], [0], [1], [0, 0, 1, 1], [], []>} : vector<8x32xbf16>, vector<32x96xbf16>, vector<8x96xf32> -> vector<8x96xf32>
    %c0_15 = arith.constant 0 : index
    %c0_16 = arith.constant 0 : index
    %28 = vector.load %arg4[%c0_15, %c0_16] : memref<2x352xf32, #tpu.memory_space<vmem>>, vector<1x96xf32>
    %29 = vector.broadcast %28 : vector<1x96xf32> to vector<8x96xf32>
    %30 = arith.addf %27, %29 : vector<8x96xf32>
    %31 = arith.truncf %30 : vector<8x96xf32> to vector<8x96xbf16>
    %32 = vector.extract_strided_slice %31 {offsets = [0, 0], sizes = [8, 16], strides = [1, 1]} : vector<8x96xbf16> to vector<8x16xbf16>
    %33 = vector.extract_strided_slice %31 {offsets = [0, 16], sizes = [8, 16], strides = [1, 1]} : vector<8x96xbf16> to vector<8x16xbf16>
    %34 = vector.shape_cast %32 : vector<8x16xbf16> to vector<1x8x16xbf16>
    %35 = vector.shape_cast %33 : vector<8x16xbf16> to vector<1x8x16xbf16>
    %36 = tpu.concatenate %34, %35 in 0 : vector<1x8x16xbf16>, vector<1x8x16xbf16> -> vector<2x8x16xbf16>
    %37 = vector.extract_strided_slice %31 {offsets = [0, 32], sizes = [8, 16], strides = [1, 1]} : vector<8x96xbf16> to vector<8x16xbf16>
    %38 = vector.extract_strided_slice %31 {offsets = [0, 48], sizes = [8, 16], strides = [1, 1]} : vector<8x96xbf16> to vector<8x16xbf16>
    %39 = vector.shape_cast %37 : vector<8x16xbf16> to vector<1x8x16xbf16>
    %40 = vector.shape_cast %38 : vector<8x16xbf16> to vector<1x8x16xbf16>
    %41 = tpu.concatenate %39, %40 in 0 : vector<1x8x16xbf16>, vector<1x8x16xbf16> -> vector<2x8x16xbf16>
    %42 = vector.extract_strided_slice %31 {offsets = [0, 64], sizes = [8, 16], strides = [1, 1]} : vector<8x96xbf16> to vector<8x16xbf16>
    %43 = vector.extract_strided_slice %31 {offsets = [0, 80], sizes = [8, 16], strides = [1, 1]} : vector<8x96xbf16> to vector<8x16xbf16>
    %44 = vector.shape_cast %42 : vector<8x16xbf16> to vector<1x8x16xbf16>
    %45 = vector.shape_cast %43 : vector<8x16xbf16> to vector<1x8x16xbf16>
    %46 = tpu.concatenate %44, %45 in 0 : vector<1x8x16xbf16>, vector<1x8x16xbf16> -> vector<2x8x16xbf16>
    %cst_17 = arith.constant dense<0.000000e+00> : vector<2x8x8xf32>
    %47 = tpu.matmul %36, %41, %cst_17 {dimension_numbers = #tpu.dot_dimension_numbers<[2], [2], [1], [1], [0, 0, 0, 1, 1, 1], [0], [0]>} : vector<2x8x16xbf16>, vector<2x8x16xbf16>, vector<2x8x8xf32> -> vector<2x8x8xf32>
    %cst_18 = arith.constant 2.500000e-01 : f32
    %48 = vector.broadcast %cst_18 : f32 to vector<2x8x8xf32>
    %49 = arith.mulf %47, %48 : vector<2x8x8xf32>
    %50 = vector.broadcast %0 : vector<1x1x8xf32> to vector<2x8x8xf32>
    %51 = arith.addf %49, %50 : vector<2x8x8xf32>
    %cst_19 = arith.constant dense<0xFF800000> : vector<2x8xf32>
    %52 = vector.multi_reduction <maximumf>, %51, %cst_19 [2] : vector<2x8x8xf32> to vector<2x8xf32>
    %53 = vector.shape_cast %52 : vector<2x8xf32> to vector<2x8x1xf32>
    %54 = vector.broadcast %53 : vector<2x8x1xf32> to vector<2x8x8xf32>
    %55 = arith.subf %51, %54 : vector<2x8x8xf32>
    %56 = math.exp %55 : vector<2x8x8xf32>
    %cst_20 = arith.constant dense<0.000000e+00> : vector<2x8xf32>
    %57 = vector.multi_reduction <add>, %56, %cst_20 [2] : vector<2x8x8xf32> to vector<2x8xf32>
    %58 = vector.shape_cast %57 : vector<2x8xf32> to vector<2x8x1xf32>
    %59 = tpu.reciprocal %58 {approx = true} : vector<2x8x1xf32> -> vector<2x8x1xf32>
    %60 = vector.broadcast %59 : vector<2x8x1xf32> to vector<2x8x8xf32>
    %61 = arith.mulf %56, %60 : vector<2x8x8xf32>
    %62 = arith.truncf %61 : vector<2x8x8xf32> to vector<2x8x8xbf16>
    %cst_21 = arith.constant dense<0.000000e+00> : vector<2x8x16xf32>
    %63 = tpu.matmul %62, %46, %cst_21 {dimension_numbers = #tpu.dot_dimension_numbers<[2], [1], [1], [2], [0, 0, 0, 1, 1, 2], [0], [0]>} : vector<2x8x8xbf16>, vector<2x8x16xbf16>, vector<2x8x16xf32> -> vector<2x8x16xf32>
    %64 = vector.extract_strided_slice %63 {offsets = [0, 0, 0], sizes = [1, 8, 16], strides = [1, 1, 1]} : vector<2x8x16xf32> to vector<1x8x16xf32>
    %65 = vector.shape_cast %64 : vector<1x8x16xf32> to vector<8x16xf32>
    %66 = vector.extract_strided_slice %63 {offsets = [1, 0, 0], sizes = [1, 8, 16], strides = [1, 1, 1]} : vector<2x8x16xf32> to vector<1x8x16xf32>
    %67 = vector.shape_cast %66 : vector<1x8x16xf32> to vector<8x16xf32>
    %68 = tpu.concatenate %65, %67 in 1 : vector<8x16xf32>, vector<8x16xf32> -> vector<8x32xf32>
    %c0_22 = arith.constant 0 : index
    %c0_23 = arith.constant 0 : index
    %c96 = arith.constant 96 : index
    %69 = vector.load %arg5[%c0_22, %c0_23, %c96] : memref<2x32x192xbf16, #tpu.memory_space<vmem>>, vector<1x32x32xbf16>
    %70 = vector.shape_cast %69 : vector<1x32x32xbf16> to vector<32x32xbf16>
    %71 = arith.truncf %68 : vector<8x32xf32> to vector<8x32xbf16>
    %cst_24 = arith.constant dense<0.000000e+00> : vector<8x32xf32>
    %72 = tpu.matmul %71, %70, %cst_24 {dimension_numbers = #tpu.dot_dimension_numbers<[1], [0], [0], [1], [0, 0, 1, 1], [], []>} : vector<8x32xbf16>, vector<32x32xbf16>, vector<8x32xf32> -> vector<8x32xf32>
    %c0_25 = arith.constant 0 : index
    %c96_26 = arith.constant 96 : index
    %73 = vector.load %arg4[%c0_25, %c96_26] : memref<2x352xf32, #tpu.memory_space<vmem>>, vector<1x32xf32>
    %74 = vector.broadcast %73 : vector<1x32xf32> to vector<8x32xf32>
    %75 = arith.addf %72, %74 : vector<8x32xf32>
    %76 = arith.addf %23, %75 : vector<8x32xf32>
    %c0_27 = arith.constant 0 : index
    %c128 = arith.constant 128 : index
    %77 = vector.load %arg4[%c0_27, %c128] : memref<2x352xf32, #tpu.memory_space<vmem>>, vector<1x32xf32>
    %c0_28 = arith.constant 0 : index
    %c160 = arith.constant 160 : index
    %78 = vector.load %arg4[%c0_28, %c160] : memref<2x352xf32, #tpu.memory_space<vmem>>, vector<1x32xf32>
    %cst_29 = arith.constant dense<0.000000e+00> : vector<8xf32>
    %79 = vector.multi_reduction <add>, %76, %cst_29 [1] : vector<8x32xf32> to vector<8xf32>
    %80 = vector.shape_cast %79 : vector<8xf32> to vector<8x1xf32>
    %cst_30 = arith.constant 3.200000e+01 : f32
    %81 = vector.broadcast %cst_30 : f32 to vector<8x1xf32>
    %82 = arith.divf %80, %81 : vector<8x1xf32>
    %83 = vector.broadcast %82 : vector<8x1xf32> to vector<8x32xf32>
    %84 = arith.subf %76, %83 : vector<8x32xf32>
    %85 = arith.mulf %84, %84 : vector<8x32xf32>
    %cst_31 = arith.constant dense<0.000000e+00> : vector<8xf32>
    %86 = vector.multi_reduction <add>, %85, %cst_31 [1] : vector<8x32xf32> to vector<8xf32>
    %87 = vector.shape_cast %86 : vector<8xf32> to vector<8x1xf32>
    %cst_32 = arith.constant 3.200000e+01 : f32
    %88 = vector.broadcast %cst_32 : f32 to vector<8x1xf32>
    %89 = arith.divf %87, %88 : vector<8x1xf32>
    %cst_33 = arith.constant 9.99999996E-13 : f32
    %90 = vector.broadcast %cst_33 : f32 to vector<8x1xf32>
    %91 = arith.addf %89, %90 : vector<8x1xf32>
    %92 = math.rsqrt %91 : vector<8x1xf32>
    %93 = vector.broadcast %92 : vector<8x1xf32> to vector<8x32xf32>
    %94 = arith.mulf %84, %93 : vector<8x32xf32>
    %95 = vector.broadcast %77 : vector<1x32xf32> to vector<8x32xf32>
    %96 = arith.mulf %94, %95 : vector<8x32xf32>
    %97 = vector.broadcast %78 : vector<1x32xf32> to vector<8x32xf32>
    %98 = arith.addf %96, %97 : vector<8x32xf32>
    %c0_34 = arith.constant 0 : index
    %c0_35 = arith.constant 0 : index
    %c128_36 = arith.constant 128 : index
    %99 = vector.load %arg5[%c0_34, %c0_35, %c128_36] : memref<2x32x192xbf16, #tpu.memory_space<vmem>>, vector<1x32x64xbf16>
    %100 = vector.shape_cast %99 : vector<1x32x64xbf16> to vector<32x64xbf16>
    %101 = arith.truncf %98 : vector<8x32xf32> to vector<8x32xbf16>
    %cst_37 = arith.constant dense<0.000000e+00> : vector<8x64xf32>
    %102 = tpu.matmul %101, %100, %cst_37 {dimension_numbers = #tpu.dot_dimension_numbers<[1], [0], [0], [1], [0, 0, 1, 1], [], []>} : vector<8x32xbf16>, vector<32x64xbf16>, vector<8x64xf32> -> vector<8x64xf32>
    %c0_38 = arith.constant 0 : index
    %c192 = arith.constant 192 : index
    %103 = vector.load %arg4[%c0_38, %c192] : memref<2x352xf32, #tpu.memory_space<vmem>>, vector<1x64xf32>
    %104 = vector.broadcast %103 : vector<1x64xf32> to vector<8x64xf32>
    %105 = arith.addf %102, %104 : vector<8x64xf32>
    %cst_39 = arith.constant 5.000000e-01 : f32
    %106 = vector.broadcast %cst_39 : f32 to vector<8x64xf32>
    %107 = arith.mulf %106, %105 : vector<8x64xf32>
    %cst_40 = arith.constant 0.707106769 : f32
    %108 = vector.broadcast %cst_40 : f32 to vector<8x64xf32>
    %109 = arith.mulf %105, %108 : vector<8x64xf32>
    %110 = math.absf %109 : vector<8x64xf32>
    %cst_41 = arith.constant 0.327591091 : f32
    %111 = vector.broadcast %cst_41 : f32 to vector<8x64xf32>
    %112 = arith.mulf %111, %110 : vector<8x64xf32>
    %cst_42 = arith.constant 1.000000e+00 : f32
    %113 = vector.broadcast %cst_42 : f32 to vector<8x64xf32>
    %114 = arith.addf %113, %112 : vector<8x64xf32>
    %cst_43 = arith.constant 1.000000e+00 : f32
    %115 = vector.broadcast %cst_43 : f32 to vector<8x64xf32>
    %116 = arith.divf %115, %114 : vector<8x64xf32>
    %cst_44 = arith.constant 1.06140542 : f32
    %117 = vector.broadcast %cst_44 : f32 to vector<8x64xf32>
    %118 = arith.mulf %117, %116 : vector<8x64xf32>
    %cst_45 = arith.constant 1.45315206 : f32
    %119 = vector.broadcast %cst_45 : f32 to vector<8x64xf32>
    %120 = arith.subf %118, %119 : vector<8x64xf32>
    %121 = arith.mulf %120, %116 : vector<8x64xf32>
    %cst_46 = arith.constant 1.42141378 : f32
    %122 = vector.broadcast %cst_46 : f32 to vector<8x64xf32>
    %123 = arith.addf %121, %122 : vector<8x64xf32>
    %124 = arith.mulf %123, %116 : vector<8x64xf32>
    %cst_47 = arith.constant 0.284496725 : f32
    %125 = vector.broadcast %cst_47 : f32 to vector<8x64xf32>
    %126 = arith.subf %124, %125 : vector<8x64xf32>
    %127 = arith.mulf %126, %116 : vector<8x64xf32>
    %cst_48 = arith.constant 0.254829586 : f32
    %128 = vector.broadcast %cst_48 : f32 to vector<8x64xf32>
    %129 = arith.addf %127, %128 : vector<8x64xf32>
    %130 = arith.mulf %129, %116 : vector<8x64xf32>
    %cst_49 = arith.constant 0.000000e+00 : f32
    %131 = vector.broadcast %cst_49 : f32 to vector<8x64xf32>
    %132 = arith.subf %131, %109 : vector<8x64xf32>
    %133 = arith.mulf %132, %109 : vector<8x64xf32>
    %134 = math.exp %133 : vector<8x64xf32>
    %135 = arith.mulf %130, %134 : vector<8x64xf32>
    %cst_50 = arith.constant 1.000000e+00 : f32
    %136 = vector.broadcast %cst_50 : f32 to vector<8x64xf32>
    %137 = arith.subf %136, %135 : vector<8x64xf32>
    %cst_51 = arith.constant 0.000000e+00 : f32
    %138 = vector.broadcast %cst_51 : f32 to vector<8x64xf32>
    %139 = arith.cmpf oge, %109, %138 : vector<8x64xf32>
    %cst_52 = arith.constant 0.000000e+00 : f32
    %140 = vector.broadcast %cst_52 : f32 to vector<8x64xf32>
    %141 = arith.subf %140, %137 : vector<8x64xf32>
    %142 = arith.select %139, %137, %141 : vector<8x64xi1>, vector<8x64xf32>
    %cst_53 = arith.constant 1.000000e+00 : f32
    %143 = vector.broadcast %cst_53 : f32 to vector<8x64xf32>
    %144 = arith.addf %143, %142 : vector<8x64xf32>
    %145 = arith.mulf %107, %144 : vector<8x64xf32>
    %c0_54 = arith.constant 0 : index
    %c0_55 = arith.constant 0 : index
    %c0_56 = arith.constant 0 : index
    %146 = vector.load %arg6[%c0_54, %c0_55, %c0_56] : memref<2x64x32xbf16, #tpu.memory_space<vmem>>, vector<1x64x32xbf16>
    %147 = vector.shape_cast %146 : vector<1x64x32xbf16> to vector<64x32xbf16>
    %148 = arith.truncf %145 : vector<8x64xf32> to vector<8x64xbf16>
    %cst_57 = arith.constant dense<0.000000e+00> : vector<8x32xf32>
    %149 = tpu.matmul %148, %147, %cst_57 {dimension_numbers = #tpu.dot_dimension_numbers<[1], [0], [0], [1], [0, 0, 1, 1], [], []>} : vector<8x64xbf16>, vector<64x32xbf16>, vector<8x32xf32> -> vector<8x32xf32>
    %c0_58 = arith.constant 0 : index
    %c256 = arith.constant 256 : index
    %150 = vector.load %arg4[%c0_58, %c256] : memref<2x352xf32, #tpu.memory_space<vmem>>, vector<1x32xf32>
    %151 = vector.broadcast %150 : vector<1x32xf32> to vector<8x32xf32>
    %152 = arith.addf %149, %151 : vector<8x32xf32>
    %153 = arith.addf %98, %152 : vector<8x32xf32>
    %c0_59 = arith.constant 0 : index
    %c288 = arith.constant 288 : index
    %154 = vector.load %arg4[%c0_59, %c288] : memref<2x352xf32, #tpu.memory_space<vmem>>, vector<1x32xf32>
    %c0_60 = arith.constant 0 : index
    %c320 = arith.constant 320 : index
    %155 = vector.load %arg4[%c0_60, %c320] : memref<2x352xf32, #tpu.memory_space<vmem>>, vector<1x32xf32>
    %cst_61 = arith.constant dense<0.000000e+00> : vector<8xf32>
    %156 = vector.multi_reduction <add>, %153, %cst_61 [1] : vector<8x32xf32> to vector<8xf32>
    %157 = vector.shape_cast %156 : vector<8xf32> to vector<8x1xf32>
    %cst_62 = arith.constant 3.200000e+01 : f32
    %158 = vector.broadcast %cst_62 : f32 to vector<8x1xf32>
    %159 = arith.divf %157, %158 : vector<8x1xf32>
    %160 = vector.broadcast %159 : vector<8x1xf32> to vector<8x32xf32>
    %161 = arith.subf %153, %160 : vector<8x32xf32>
    %162 = arith.mulf %161, %161 : vector<8x32xf32>
    %cst_63 = arith.constant dense<0.000000e+00> : vector<8xf32>
    %163 = vector.multi_reduction <add>, %162, %cst_63 [1] : vector<8x32xf32> to vector<8xf32>
    %164 = vector.shape_cast %163 : vector<8xf32> to vector<8x1xf32>
    %cst_64 = arith.constant 3.200000e+01 : f32
    %165 = vector.broadcast %cst_64 : f32 to vector<8x1xf32>
    %166 = arith.divf %164, %165 : vector<8x1xf32>
    %cst_65 = arith.constant 9.99999996E-13 : f32
    %167 = vector.broadcast %cst_65 : f32 to vector<8x1xf32>
    %168 = arith.addf %166, %167 : vector<8x1xf32>
    %169 = math.rsqrt %168 : vector<8x1xf32>
    %170 = vector.broadcast %169 : vector<8x1xf32> to vector<8x32xf32>
    %171 = arith.mulf %161, %170 : vector<8x32xf32>
    %172 = vector.broadcast %154 : vector<1x32xf32> to vector<8x32xf32>
    %173 = arith.mulf %171, %172 : vector<8x32xf32>
    %174 = vector.broadcast %155 : vector<1x32xf32> to vector<8x32xf32>
    %175 = arith.addf %173, %174 : vector<8x32xf32>
    %c1_66 = arith.constant 1 : index
    %c0_67 = arith.constant 0 : index
    %c0_68 = arith.constant 0 : index
    %176 = vector.load %arg5[%c1_66, %c0_67, %c0_68] : memref<2x32x192xbf16, #tpu.memory_space<vmem>>, vector<1x32x96xbf16>
    %177 = vector.shape_cast %176 : vector<1x32x96xbf16> to vector<32x96xbf16>
    %178 = arith.truncf %175 : vector<8x32xf32> to vector<8x32xbf16>
    %cst_69 = arith.constant dense<0.000000e+00> : vector<8x96xf32>
    %179 = tpu.matmul %178, %177, %cst_69 {dimension_numbers = #tpu.dot_dimension_numbers<[1], [0], [0], [1], [0, 0, 1, 1], [], []>} : vector<8x32xbf16>, vector<32x96xbf16>, vector<8x96xf32> -> vector<8x96xf32>
    %c1_70 = arith.constant 1 : index
    %c0_71 = arith.constant 0 : index
    %180 = vector.load %arg4[%c1_70, %c0_71] : memref<2x352xf32, #tpu.memory_space<vmem>>, vector<1x96xf32>
    %181 = vector.broadcast %180 : vector<1x96xf32> to vector<8x96xf32>
    %182 = arith.addf %179, %181 : vector<8x96xf32>
    %183 = arith.truncf %182 : vector<8x96xf32> to vector<8x96xbf16>
    %184 = vector.extract_strided_slice %183 {offsets = [0, 0], sizes = [8, 16], strides = [1, 1]} : vector<8x96xbf16> to vector<8x16xbf16>
    %185 = vector.extract_strided_slice %183 {offsets = [0, 16], sizes = [8, 16], strides = [1, 1]} : vector<8x96xbf16> to vector<8x16xbf16>
    %186 = vector.shape_cast %184 : vector<8x16xbf16> to vector<1x8x16xbf16>
    %187 = vector.shape_cast %185 : vector<8x16xbf16> to vector<1x8x16xbf16>
    %188 = tpu.concatenate %186, %187 in 0 : vector<1x8x16xbf16>, vector<1x8x16xbf16> -> vector<2x8x16xbf16>
    %189 = vector.extract_strided_slice %183 {offsets = [0, 32], sizes = [8, 16], strides = [1, 1]} : vector<8x96xbf16> to vector<8x16xbf16>
    %190 = vector.extract_strided_slice %183 {offsets = [0, 48], sizes = [8, 16], strides = [1, 1]} : vector<8x96xbf16> to vector<8x16xbf16>
    %191 = vector.shape_cast %189 : vector<8x16xbf16> to vector<1x8x16xbf16>
    %192 = vector.shape_cast %190 : vector<8x16xbf16> to vector<1x8x16xbf16>
    %193 = tpu.concatenate %191, %192 in 0 : vector<1x8x16xbf16>, vector<1x8x16xbf16> -> vector<2x8x16xbf16>
    %194 = vector.extract_strided_slice %183 {offsets = [0, 64], sizes = [8, 16], strides = [1, 1]} : vector<8x96xbf16> to vector<8x16xbf16>
    %195 = vector.extract_strided_slice %183 {offsets = [0, 80], sizes = [8, 16], strides = [1, 1]} : vector<8x96xbf16> to vector<8x16xbf16>
    %196 = vector.shape_cast %194 : vector<8x16xbf16> to vector<1x8x16xbf16>
    %197 = vector.shape_cast %195 : vector<8x16xbf16> to vector<1x8x16xbf16>
    %198 = tpu.concatenate %196, %197 in 0 : vector<1x8x16xbf16>, vector<1x8x16xbf16> -> vector<2x8x16xbf16>
    %cst_72 = arith.constant dense<0.000000e+00> : vector<2x8x8xf32>
    %199 = tpu.matmul %188, %193, %cst_72 {dimension_numbers = #tpu.dot_dimension_numbers<[2], [2], [1], [1], [0, 0, 0, 1, 1, 1], [0], [0]>} : vector<2x8x16xbf16>, vector<2x8x16xbf16>, vector<2x8x8xf32> -> vector<2x8x8xf32>
    %cst_73 = arith.constant 2.500000e-01 : f32
    %200 = vector.broadcast %cst_73 : f32 to vector<2x8x8xf32>
    %201 = arith.mulf %199, %200 : vector<2x8x8xf32>
    %202 = vector.broadcast %0 : vector<1x1x8xf32> to vector<2x8x8xf32>
    %203 = arith.addf %201, %202 : vector<2x8x8xf32>
    %cst_74 = arith.constant dense<0xFF800000> : vector<2x8xf32>
    %204 = vector.multi_reduction <maximumf>, %203, %cst_74 [2] : vector<2x8x8xf32> to vector<2x8xf32>
    %205 = vector.shape_cast %204 : vector<2x8xf32> to vector<2x8x1xf32>
    %206 = vector.broadcast %205 : vector<2x8x1xf32> to vector<2x8x8xf32>
    %207 = arith.subf %203, %206 : vector<2x8x8xf32>
    %208 = math.exp %207 : vector<2x8x8xf32>
    %cst_75 = arith.constant dense<0.000000e+00> : vector<2x8xf32>
    %209 = vector.multi_reduction <add>, %208, %cst_75 [2] : vector<2x8x8xf32> to vector<2x8xf32>
    %210 = vector.shape_cast %209 : vector<2x8xf32> to vector<2x8x1xf32>
    %211 = tpu.reciprocal %210 {approx = true} : vector<2x8x1xf32> -> vector<2x8x1xf32>
    %212 = vector.broadcast %211 : vector<2x8x1xf32> to vector<2x8x8xf32>
    %213 = arith.mulf %208, %212 : vector<2x8x8xf32>
    %214 = arith.truncf %213 : vector<2x8x8xf32> to vector<2x8x8xbf16>
    %cst_76 = arith.constant dense<0.000000e+00> : vector<2x8x16xf32>
    %215 = tpu.matmul %214, %198, %cst_76 {dimension_numbers = #tpu.dot_dimension_numbers<[2], [1], [1], [2], [0, 0, 0, 1, 1, 2], [0], [0]>} : vector<2x8x8xbf16>, vector<2x8x16xbf16>, vector<2x8x16xf32> -> vector<2x8x16xf32>
    %216 = vector.extract_strided_slice %215 {offsets = [0, 0, 0], sizes = [1, 8, 16], strides = [1, 1, 1]} : vector<2x8x16xf32> to vector<1x8x16xf32>
    %217 = vector.shape_cast %216 : vector<1x8x16xf32> to vector<8x16xf32>
    %218 = vector.extract_strided_slice %215 {offsets = [1, 0, 0], sizes = [1, 8, 16], strides = [1, 1, 1]} : vector<2x8x16xf32> to vector<1x8x16xf32>
    %219 = vector.shape_cast %218 : vector<1x8x16xf32> to vector<8x16xf32>
    %220 = tpu.concatenate %217, %219 in 1 : vector<8x16xf32>, vector<8x16xf32> -> vector<8x32xf32>
    %c1_77 = arith.constant 1 : index
    %c0_78 = arith.constant 0 : index
    %c96_79 = arith.constant 96 : index
    %221 = vector.load %arg5[%c1_77, %c0_78, %c96_79] : memref<2x32x192xbf16, #tpu.memory_space<vmem>>, vector<1x32x32xbf16>
    %222 = vector.shape_cast %221 : vector<1x32x32xbf16> to vector<32x32xbf16>
    %223 = arith.truncf %220 : vector<8x32xf32> to vector<8x32xbf16>
    %cst_80 = arith.constant dense<0.000000e+00> : vector<8x32xf32>
    %224 = tpu.matmul %223, %222, %cst_80 {dimension_numbers = #tpu.dot_dimension_numbers<[1], [0], [0], [1], [0, 0, 1, 1], [], []>} : vector<8x32xbf16>, vector<32x32xbf16>, vector<8x32xf32> -> vector<8x32xf32>
    %c1_81 = arith.constant 1 : index
    %c96_82 = arith.constant 96 : index
    %225 = vector.load %arg4[%c1_81, %c96_82] : memref<2x352xf32, #tpu.memory_space<vmem>>, vector<1x32xf32>
    %226 = vector.broadcast %225 : vector<1x32xf32> to vector<8x32xf32>
    %227 = arith.addf %224, %226 : vector<8x32xf32>
    %228 = arith.addf %175, %227 : vector<8x32xf32>
    %c1_83 = arith.constant 1 : index
    %c128_84 = arith.constant 128 : index
    %229 = vector.load %arg4[%c1_83, %c128_84] : memref<2x352xf32, #tpu.memory_space<vmem>>, vector<1x32xf32>
    %c1_85 = arith.constant 1 : index
    %c160_86 = arith.constant 160 : index
    %230 = vector.load %arg4[%c1_85, %c160_86] : memref<2x352xf32, #tpu.memory_space<vmem>>, vector<1x32xf32>
    %cst_87 = arith.constant dense<0.000000e+00> : vector<8xf32>
    %231 = vector.multi_reduction <add>, %228, %cst_87 [1] : vector<8x32xf32> to vector<8xf32>
    %232 = vector.shape_cast %231 : vector<8xf32> to vector<8x1xf32>
    %cst_88 = arith.constant 3.200000e+01 : f32
    %233 = vector.broadcast %cst_88 : f32 to vector<8x1xf32>
    %234 = arith.divf %232, %233 : vector<8x1xf32>
    %235 = vector.broadcast %234 : vector<8x1xf32> to vector<8x32xf32>
    %236 = arith.subf %228, %235 : vector<8x32xf32>
    %237 = arith.mulf %236, %236 : vector<8x32xf32>
    %cst_89 = arith.constant dense<0.000000e+00> : vector<8xf32>
    %238 = vector.multi_reduction <add>, %237, %cst_89 [1] : vector<8x32xf32> to vector<8xf32>
    %239 = vector.shape_cast %238 : vector<8xf32> to vector<8x1xf32>
    %cst_90 = arith.constant 3.200000e+01 : f32
    %240 = vector.broadcast %cst_90 : f32 to vector<8x1xf32>
    %241 = arith.divf %239, %240 : vector<8x1xf32>
    %cst_91 = arith.constant 9.99999996E-13 : f32
    %242 = vector.broadcast %cst_91 : f32 to vector<8x1xf32>
    %243 = arith.addf %241, %242 : vector<8x1xf32>
    %244 = math.rsqrt %243 : vector<8x1xf32>
    %245 = vector.broadcast %244 : vector<8x1xf32> to vector<8x32xf32>
    %246 = arith.mulf %236, %245 : vector<8x32xf32>
    %247 = vector.broadcast %229 : vector<1x32xf32> to vector<8x32xf32>
    %248 = arith.mulf %246, %247 : vector<8x32xf32>
    %249 = vector.broadcast %230 : vector<1x32xf32> to vector<8x32xf32>
    %250 = arith.addf %248, %249 : vector<8x32xf32>
    %c1_92 = arith.constant 1 : index
    %c0_93 = arith.constant 0 : index
    %c128_94 = arith.constant 128 : index
    %251 = vector.load %arg5[%c1_92, %c0_93, %c128_94] : memref<2x32x192xbf16, #tpu.memory_space<vmem>>, vector<1x32x64xbf16>
    %252 = vector.shape_cast %251 : vector<1x32x64xbf16> to vector<32x64xbf16>
    %253 = arith.truncf %250 : vector<8x32xf32> to vector<8x32xbf16>
    %cst_95 = arith.constant dense<0.000000e+00> : vector<8x64xf32>
    %254 = tpu.matmul %253, %252, %cst_95 {dimension_numbers = #tpu.dot_dimension_numbers<[1], [0], [0], [1], [0, 0, 1, 1], [], []>} : vector<8x32xbf16>, vector<32x64xbf16>, vector<8x64xf32> -> vector<8x64xf32>
    %c1_96 = arith.constant 1 : index
    %c192_97 = arith.constant 192 : index
    %255 = vector.load %arg4[%c1_96, %c192_97] : memref<2x352xf32, #tpu.memory_space<vmem>>, vector<1x64xf32>
    %256 = vector.broadcast %255 : vector<1x64xf32> to vector<8x64xf32>
    %257 = arith.addf %254, %256 : vector<8x64xf32>
    %cst_98 = arith.constant 5.000000e-01 : f32
    %258 = vector.broadcast %cst_98 : f32 to vector<8x64xf32>
    %259 = arith.mulf %258, %257 : vector<8x64xf32>
    %cst_99 = arith.constant 0.707106769 : f32
    %260 = vector.broadcast %cst_99 : f32 to vector<8x64xf32>
    %261 = arith.mulf %257, %260 : vector<8x64xf32>
    %262 = math.absf %261 : vector<8x64xf32>
    %cst_100 = arith.constant 0.327591091 : f32
    %263 = vector.broadcast %cst_100 : f32 to vector<8x64xf32>
    %264 = arith.mulf %263, %262 : vector<8x64xf32>
    %cst_101 = arith.constant 1.000000e+00 : f32
    %265 = vector.broadcast %cst_101 : f32 to vector<8x64xf32>
    %266 = arith.addf %265, %264 : vector<8x64xf32>
    %cst_102 = arith.constant 1.000000e+00 : f32
    %267 = vector.broadcast %cst_102 : f32 to vector<8x64xf32>
    %268 = arith.divf %267, %266 : vector<8x64xf32>
    %cst_103 = arith.constant 1.06140542 : f32
    %269 = vector.broadcast %cst_103 : f32 to vector<8x64xf32>
    %270 = arith.mulf %269, %268 : vector<8x64xf32>
    %cst_104 = arith.constant 1.45315206 : f32
    %271 = vector.broadcast %cst_104 : f32 to vector<8x64xf32>
    %272 = arith.subf %270, %271 : vector<8x64xf32>
    %273 = arith.mulf %272, %268 : vector<8x64xf32>
    %cst_105 = arith.constant 1.42141378 : f32
    %274 = vector.broadcast %cst_105 : f32 to vector<8x64xf32>
    %275 = arith.addf %273, %274 : vector<8x64xf32>
    %276 = arith.mulf %275, %268 : vector<8x64xf32>
    %cst_106 = arith.constant 0.284496725 : f32
    %277 = vector.broadcast %cst_106 : f32 to vector<8x64xf32>
    %278 = arith.subf %276, %277 : vector<8x64xf32>
    %279 = arith.mulf %278, %268 : vector<8x64xf32>
    %cst_107 = arith.constant 0.254829586 : f32
    %280 = vector.broadcast %cst_107 : f32 to vector<8x64xf32>
    %281 = arith.addf %279, %280 : vector<8x64xf32>
    %282 = arith.mulf %281, %268 : vector<8x64xf32>
    %cst_108 = arith.constant 0.000000e+00 : f32
    %283 = vector.broadcast %cst_108 : f32 to vector<8x64xf32>
    %284 = arith.subf %283, %261 : vector<8x64xf32>
    %285 = arith.mulf %284, %261 : vector<8x64xf32>
    %286 = math.exp %285 : vector<8x64xf32>
    %287 = arith.mulf %282, %286 : vector<8x64xf32>
    %cst_109 = arith.constant 1.000000e+00 : f32
    %288 = vector.broadcast %cst_109 : f32 to vector<8x64xf32>
    %289 = arith.subf %288, %287 : vector<8x64xf32>
    %cst_110 = arith.constant 0.000000e+00 : f32
    %290 = vector.broadcast %cst_110 : f32 to vector<8x64xf32>
    %291 = arith.cmpf oge, %261, %290 : vector<8x64xf32>
    %cst_111 = arith.constant 0.000000e+00 : f32
    %292 = vector.broadcast %cst_111 : f32 to vector<8x64xf32>
    %293 = arith.subf %292, %289 : vector<8x64xf32>
    %294 = arith.select %291, %289, %293 : vector<8x64xi1>, vector<8x64xf32>
    %cst_112 = arith.constant 1.000000e+00 : f32
    %295 = vector.broadcast %cst_112 : f32 to vector<8x64xf32>
    %296 = arith.addf %295, %294 : vector<8x64xf32>
    %297 = arith.mulf %259, %296 : vector<8x64xf32>
    %c1_113 = arith.constant 1 : index
    %c0_114 = arith.constant 0 : index
    %c0_115 = arith.constant 0 : index
    %298 = vector.load %arg6[%c1_113, %c0_114, %c0_115] : memref<2x64x32xbf16, #tpu.memory_space<vmem>>, vector<1x64x32xbf16>
    %299 = vector.shape_cast %298 : vector<1x64x32xbf16> to vector<64x32xbf16>
    %300 = arith.truncf %297 : vector<8x64xf32> to vector<8x64xbf16>
    %cst_116 = arith.constant dense<0.000000e+00> : vector<8x32xf32>
    %301 = tpu.matmul %300, %299, %cst_116 {dimension_numbers = #tpu.dot_dimension_numbers<[1], [0], [0], [1], [0, 0, 1, 1], [], []>} : vector<8x64xbf16>, vector<64x32xbf16>, vector<8x32xf32> -> vector<8x32xf32>
    %c1_117 = arith.constant 1 : index
    %c256_118 = arith.constant 256 : index
    %302 = vector.load %arg4[%c1_117, %c256_118] : memref<2x352xf32, #tpu.memory_space<vmem>>, vector<1x32xf32>
    %303 = vector.broadcast %302 : vector<1x32xf32> to vector<8x32xf32>
    %304 = arith.addf %301, %303 : vector<8x32xf32>
    %305 = arith.addf %250, %304 : vector<8x32xf32>
    %c1_119 = arith.constant 1 : index
    %c288_120 = arith.constant 288 : index
    %306 = vector.load %arg4[%c1_119, %c288_120] : memref<2x352xf32, #tpu.memory_space<vmem>>, vector<1x32xf32>
    %c1_121 = arith.constant 1 : index
    %c320_122 = arith.constant 320 : index
    %307 = vector.load %arg4[%c1_121, %c320_122] : memref<2x352xf32, #tpu.memory_space<vmem>>, vector<1x32xf32>
    %cst_123 = arith.constant dense<0.000000e+00> : vector<8xf32>
    %308 = vector.multi_reduction <add>, %305, %cst_123 [1] : vector<8x32xf32> to vector<8xf32>
    %309 = vector.shape_cast %308 : vector<8xf32> to vector<8x1xf32>
    %cst_124 = arith.constant 3.200000e+01 : f32
    %310 = vector.broadcast %cst_124 : f32 to vector<8x1xf32>
    %311 = arith.divf %309, %310 : vector<8x1xf32>
    %312 = vector.broadcast %311 : vector<8x1xf32> to vector<8x32xf32>
    %313 = arith.subf %305, %312 : vector<8x32xf32>
    %314 = arith.mulf %313, %313 : vector<8x32xf32>
    %cst_125 = arith.constant dense<0.000000e+00> : vector<8xf32>
    %315 = vector.multi_reduction <add>, %314, %cst_125 [1] : vector<8x32xf32> to vector<8xf32>
    %316 = vector.shape_cast %315 : vector<8xf32> to vector<8x1xf32>
    %cst_126 = arith.constant 3.200000e+01 : f32
    %317 = vector.broadcast %cst_126 : f32 to vector<8x1xf32>
    %318 = arith.divf %316, %317 : vector<8x1xf32>
    %cst_127 = arith.constant 9.99999996E-13 : f32
    %319 = vector.broadcast %cst_127 : f32 to vector<8x1xf32>
    %320 = arith.addf %318, %319 : vector<8x1xf32>
    %321 = math.rsqrt %320 : vector<8x1xf32>
    %322 = vector.broadcast %321 : vector<8x1xf32> to vector<8x32xf32>
    %323 = arith.mulf %313, %322 : vector<8x32xf32>
    %324 = vector.broadcast %306 : vector<1x32xf32> to vector<8x32xf32>
    %325 = arith.mulf %323, %324 : vector<8x32xf32>
    %326 = vector.broadcast %307 : vector<1x32xf32> to vector<8x32xf32>
    %327 = arith.addf %325, %326 : vector<8x32xf32>
    %c0_128 = arith.constant 0 : index
    %c0_129 = arith.constant 0 : index
    %328 = vector.load %arg8[%c0_128, %c0_129] : memref<8x32xf32, #tpu.memory_space<vmem>>, vector<8x32xf32>
    tpu.vector_store %arg8[%c0_128, %c0_129], %327 {strides = array<i32>} : memref<8x32xf32, #tpu.memory_space<vmem>>, vector<8x32xf32>,
    %329 = vector.extract_strided_slice %327 {offsets = [0, 0], sizes = [1, 32], strides = [1, 1]} : vector<8x32xf32> to vector<1x32xf32>
    %c0_130 = arith.constant 0 : index
    %c0_131 = arith.constant 0 : index
    %330 = vector.load %arg7[%c0_130, %c0_131] : memref<32x32xbf16, #tpu.memory_space<vmem>>, vector<32x32xbf16>
    %331 = arith.truncf %329 : vector<1x32xf32> to vector<1x32xbf16>
    %cst_132 = arith.constant dense<0.000000e+00> : vector<1x32xf32>
    %332 = tpu.matmul %331, %330, %cst_132 {dimension_numbers = #tpu.dot_dimension_numbers<[1], [0], [0], [1], [0, 0, 1, 1], [], []>} : vector<1x32xbf16>, vector<32x32xbf16>, vector<1x32xf32> -> vector<1x32xf32>
    %c2 = arith.constant 2 : index
    %c0_133 = arith.constant 0 : index
    %333 = vector.load %arg3[%c2, %c0_133] : memref<3x32xf32, #tpu.memory_space<vmem>>, vector<1x32xf32>
    %334 = arith.addf %332, %333 : vector<1x32xf32>
    %335 = math.tanh %334 : vector<1x32xf32>
    %c0_134 = arith.constant 0 : index
    %c0_135 = arith.constant 0 : index
    %c0_136 = arith.constant 0 : index
    %336 = vector.load %arg9[%c0_134, %c0_135, %c0_136] : memref<1x1x32xf32, #tpu.memory_space<vmem>>, vector<1x1x32xf32>
    %337 = vector.shape_cast %336 : vector<1x1x32xf32> to vector<1x32xf32>
    %338 = vector.shape_cast %335 : vector<1x32xf32> to vector<1x1x32xf32>
    tpu.vector_store %arg9[%c0_134, %c0_135, %c0_136], %338 {strides = array<i32>} : memref<1x1x32xf32, #tpu.memory_space<vmem>>, vector<1x1x32xf32>,
    return
  }
  func.func @transform_0(%arg0: i32) -> (i32, i32) {
    %c0_i32 = arith.constant 0 : i32
    %c0_i32_0 = arith.constant 0 : i32
    return %arg0, %c0_i32 : i32, i32
  }
  func.func @transform_1(%arg0: i32) -> (i32, i32, i32) {
    %c0_i32 = arith.constant 0 : i32
    %c0_i32_0 = arith.constant 0 : i32
    %c0_i32_1 = arith.constant 0 : i32
    return %arg0, %c0_i32, %c0_i32_0 : i32, i32, i32
  }
  func.func @transform_2(%arg0: i32) -> (i32, i32) {
    %c0_i32 = arith.constant 0 : i32
    %c0_i32_0 = arith.constant 0 : i32
    %c0_i32_1 = arith.constant 0 : i32
    return %c0_i32, %c0_i32_0 : i32, i32
  }
  func.func @transform_3(%arg0: i32) -> (i32, i32) {
    %c0_i32 = arith.constant 0 : i32
    %c0_i32_0 = arith.constant 0 : i32
    %c0_i32_1 = arith.constant 0 : i32
    return %c0_i32, %c0_i32_0 : i32, i32
  }
  func.func @transform_4(%arg0: i32) -> (i32, i32, i32) {
    %c0_i32 = arith.constant 0 : i32
    %c0_i32_0 = arith.constant 0 : i32
    %c0_i32_1 = arith.constant 0 : i32
    %c0_i32_2 = arith.constant 0 : i32
    return %c0_i32, %c0_i32_0, %c0_i32_1 : i32, i32, i32
  }
  func.func @transform_5(%arg0: i32) -> (i32, i32, i32) {
    %c0_i32 = arith.constant 0 : i32
    %c0_i32_0 = arith.constant 0 : i32
    %c0_i32_1 = arith.constant 0 : i32
    %c0_i32_2 = arith.constant 0 : i32
    return %c0_i32, %c0_i32_0, %c0_i32_1 : i32, i32, i32
  }
  func.func @transform_6(%arg0: i32) -> (i32, i32) {
    %c0_i32 = arith.constant 0 : i32
    %c0_i32_0 = arith.constant 0 : i32
    %c0_i32_1 = arith.constant 0 : i32
    return %c0_i32, %c0_i32_0 : i32, i32
  }
  func.func @transform_7(%arg0: i32) -> (i32, i32) {
    %c0_i32 = arith.constant 0 : i32
    %c0_i32_0 = arith.constant 0 : i32
    return %arg0, %c0_i32 : i32, i32
  }
  func.func @transform_8(%arg0: i32) -> (i32, i32, i32) {
    %c0_i32 = arith.constant 0 : i32
    %c0_i32_0 = arith.constant 0 : i32
    %c0_i32_1 = arith.constant 0 : i32
    return %arg0, %c0_i32, %c0_i32_0 : i32, i32, i32
  }
}

</mosaic_0001>

<bundles_post_ra>
// kernel: tpu_custom_call.1
= control target key start
LH: loop header
LB: loop body
LE: loop exit
PB: predicated region body
PF: predicated region fallthrough
CT: control target
= control target key end

     0   :  { %s2171_s0 = inlined_call_operand.vmem [shape: f32[16,32], index: 0, kind: input, shape index: {}]   ;;  %s2172_s1 = inlined_call_operand.vmem [shape: f32[2,1,8], index: 1, kind: input, shape index: {}]   ;;  %s2173_s2 = inlined_call_operand.hbm [shape: f32[3,32], index: 2, kind: input, shape index: {}]   ;;  %s2174_s3 = inlined_call_operand.hbm [shape: f32[2,352], index: 3, kind: input, shape index: {}]   ;;  %s2175_s4 = inlined_call_operand.vmem [shape: bf16[2,32,192], index: 4, kind: input, shape index: {}]   ;;  %s2176_s5 = inlined_call_operand.vmem [shape: bf16[2,64,32], index: 5, kind: input, shape index: {}]   ;;  %s2177_s6 = inlined_call_operand.vmem [shape: bf16[32,32], index: 6, kind: input, shape index: {}]   ;;  %s2178_s7 = inlined_call_operand.hbm [shape: f32[16,32], index: 7, kind: output, shape index: {0}]   ;;  %s2179_s8 = inlined_call_operand.hbm [shape: f32[2,1,32], index: 8, kind: output, shape index: {1}]  }
   0x1   :  { %2180 = sst [smem:[#allocation14_spill]] %s2171_s0 }
   0x2   :  { %2181 = sst [smem:[#allocation15_spill]] %s2172_s1 }
   0x3   :  { %2182 = sst [smem:[#allocation16_spill]] %s2173_s2 }
   0x4   :  { %14 = vsyncpa [#allocation3], 0 }
   0x5   :  { %15 = vsyncpa [#allocation6], 0 }
   0x6   :  { %16 = vsyncpa [#allocation4], 0 }
   0x7   :  { %18 = vsyncpa [#allocation4 + $0x1], 0 }
   0x8   :  { %19 = vsyncpa [#allocation9], 0 }
   0x9   :  { %21 = vsyncpa [#allocation9 + $0x1], 0  ;;  %s1822_s27 = smov 0   ;;  %s1824_s28 = smov 0  }
   0xa   :  { %s1826_s29 = smov 0   ;;  %s1828_s30 = smov 0  }
   0xb LB: > { %s1843_s9 = sadd.s32 4294967295, %s1767_s30   ;;  %s1346_s10 = sadd.s32 4294967294, %s1767_s30   ;;  %s1767_s30 = sphi %s1828_s30, %s2192_s30   ;;  %s1763_s29 = sphi %s1826_s29, %s2191_s29   ;;  %s1759_s28 = sphi %s1824_s28, %s2190_s28   ;;  %s1755_s27 = sphi %s1822_s27, %s2189_s27  }
   0xc   : > { %s1847_s11 = sadd.s32 1, %s1767_s30   ;;  %s191_s12 = sadd.s32 1, %s1763_s29 }
   0xd   : > { %s188_s13 = ssub.s32 %s1767_s30, %s1847_s11  ;;  %p201_p0 = scmp.ne.s32.totalorder %s1763_s29, %s1759_s28 }
   0xe   : > { %p189_p1 = scmp.eq.s32.totalorder %s188_s13, 0  ;;  %p202_p2 = scmp.eq.s32.totalorder %s1843_s9, 1 }
   0xf   : > { %p207_p3 = scmp.ne.s32.totalorder %s1759_s28, %s1755_s27  ;;  %p208_p4 = scmp.eq.s32.totalorder %s1346_s10, 1 }
  0x10   : > { %s1858_s14 = scalar_select %p189_p1, %s1763_s29, %s191_s12  }
  0x11   : > { %p1860_p5 = por %p202_p2, %p201_p0  ;;  %p1864_p6 = por %p208_p4, %p207_p3 }
  0x12   : > { %p1347_p7 = scmp.ge.s32.totalorder %s1767_s30, 1  ;;  %p241_p8 = scmp.lt.s32.totalorder %s1767_s30, 3 }
  0x13   : > { %p1513_p9 = scmp.eq.s32.totalorder %s1843_s9, 0  ;;  %s2186_s2 = sld [smem:[#allocation16_spill]] }
  0x14   : > { %p1871_p10 = pnand %p1347_p7, %p241_p8  ;;  %s1769_s21 = smov [#allocation2]  }
  0x15   : > { %s255_s22 = sshll.u32 %s1769_s21, 4  ;;  %s265_s25 = sshll.u32 %s2174_s3, 4  ;;  %s256_s22 = int_to_ptr.vmem [resolvable:$true] %s255_s22  ;;  %s266_s25 = int_to_ptr.hbm [resolvable:$true] %s265_s25 }
  0x16   : > { %p1499_p11 = pneg %p1871_p10  ;;  %s1770_s26 = smov [#allocation5]  }
  0x17   : > { %s267_s10 = sshll.u32 %s1770_s26, 4  ;;  %302 = sbr.rel (%p1871_p10) target bundleno = 4397 (0x112d), region = 48  ;;  %s268_s10 = int_to_ptr.vmem [resolvable:$true] %s267_s10 }
  0x18   : > { %p1500_p12 = pnand %p1513_p9, %p1499_p11 }
  0x19   : > { %s253_s20 = sshll.u32 %s2186_s2, 4  ;;  %s254_s20 = int_to_ptr.hbm [resolvable:$true] %s253_s20 }
  0x1a   : > { %1502 = dma.hbm_to_vmem [thread:$0]  (!%p1500_p12), %s254_s20, 64, %s256_s22, [#allocation3]  }
  0x1b   : > { %1505 = dma.hbm_to_vmem [thread:$0]  (!%p1500_p12), %s266_s25, 96, %s268_s10, [#allocation6]  }
  0x1c   : > { %1738 = dma.done.wait (%p1513_p9), [#allocation3], 64  }
  0x1d   : > { %1740 = vsyncadd (%p1513_p9), [#allocation3], 4294967232 }
  0x1e   : > { %1742 = dma.done.wait (%p1513_p9), [#allocation6], 96  }
  0x1f   : > { %1744 = vsyncadd (%p1513_p9), [#allocation6], 4294967200  ;;  %p348_p13 = scmp.lt.s32.totalorder %s1843_s9, 1  ;;  %s2187_s0 = sld [smem:[#allocation14_spill]]  ;;  %vm360_vm0 = vcmask 261120   ;;  %v1771_v2 = vmov 32.0  }
  0x20   : > { %s2188_s1 = sld [smem:[#allocation15_spill]]  ;;  %1567 = vrcp.f32 %v1771_v2  ;;  %v1362_v14 = vld [vmem:[%s2175_s4 + $0x10] sm:$0xf]  ;;  %v1470_v15 = vld [vmem:[%s2175_s4 + $0x14] sm:$0xf0]  ;;  %s1773_s20 = smov 96  }
  0x21   : > { %s1897_s12 = scalar_select %p348_p13, %s1843_s9, 1  ;;  %v1918_v16 = vor.u32 %v1470_v15, %v1362_v14  ;;  %v1358_v17 = vld [vmem:[%s2175_s4] sm:$0xf]  ;;  %v1469_v18 = vld [vmem:[%s2175_s4 + $0x4] sm:$0xf0]  ;;  %vm437_vm5 = vcmask 130048  }
  0x22   : > { %v1927_v19 = vor.u32 %v1469_v18, %v1358_v17  ;;  %v1559_v29 = vld [vmem:[#allocation2] ss:$0 sm:$0xff]  ;;  %v1560_v32 = vld [vmem:[#allocation2 + $0x1] ss:$0 sm:$0xff]  ;;  %v1936_v36 = vld [vmem:[#allocation5] ss:$0 sm:$0xff] }
  0x23   : > { %s1355_s13 = sshll.u32 %s1897_s12, 3  ;;  %422 = vmatpush.bf16.msra.mxu0 %v1918_v16  ;;  %vm487_vm6 = vcmask 64512   ;;  %s1774_s24 = smov 64   ;;  %vm517_vm7 = vcmask 1043456  }
  0x24   : > { %s1466_s23 = sshll.u32 %s1843_s9, 3 }
  0x25   : > { %s351_s19 = scalar_lea.vmem %s2187_s0, %s1355_s13  ;;  %s1685_s0 = scalar_lea.hbm %s2178_s7, 16 }
  0x26   : > { %s354_s22 = scalar_lea.vmem %s2188_s1, %s1897_s12  ;;  %v357_v0 = vld [vmem:[%s351_s19] sm:$0xff]  ;;  %v1568_v3 = vpop.eup %1567  ;;  %s1772_s19 = smov 112  }
  0x27   : > { %v361_v1 = vsel %vm360_vm0, %v357_v0, 0.0  ;;  %v365_v4 = vmul.f32 32.0, %v1568_v3  ;;  %vm369_vm1 = vweird.f32 %v1568_v3  ;;  %423 = vmatpush.bf16.msra.mxu0 %v1927_v19  ;;  %v1951_v50 = vld [vmem:[%s354_s22] ss:$0 sm:$0xff]  ;;  %s1775_s12 = smov 32   ;;  %s1776_s22 = smov 16  }
  0x28   : > { %362 = vadd.xlane.f32.xlu0 %v361_v1 }
  0x29   : > { %v366_v5 = vsub.f32 1.0, %v365_v4 }
  0x2b   : > { %v367_v6 = vmul.f32 %v1568_v3, %v366_v5 }
  0x2d   : > { %v368_v7 = vadd.f32 %v1568_v3, %v367_v6 }
  0x2f   : > { %v1908_v8 = vsel %vm369_vm1, %v1568_v3, %v368_v7  ;;  %vm729_vm1 = vcmask 523264  }
  0x9b   : > { %v363_v9 = vpop.xlane.xlu0 %362 }
  0x9c   : > { %v371_v10 = vmul.f32 %v1908_v8, %v363_v9 }
  0x9e   : > { %v372_v11 = vsub.f32 %v357_v0, %v371_v10 }
  0xa0   : > { %v373_v12 = vmul.f32 %v372_v11, %v372_v11 }
  0xa2   : > { %v374_v13 = vsel %vm360_vm0, %v373_v12, 0.0 }
  0xa3   : > { %375 = vadd.xlane.f32.xlu0 %v374_v13 }
 0x116   : > { %v376_v20 = vpop.xlane.xlu0 %375 }
 0x117   : > { %v377_v21 = vmul.f32 %v376_v20, %v1908_v8 }
 0x119   : > { %v378_v22 = vadd.f32 1e-12, %v377_v21 }
 0x11b   : > { %1569 = vrsqrt.f32 %v378_v22  ;;  %vm385_vm3 = vweird.f32 %v378_v22 }
 0x121   : > { %v1570_v23 = vpop.eup %1569 }
 0x122   : > { %v380_v24 = vmul.f32 %v1570_v23, %v378_v22  ;;  %vm386_vm2 = vweird.f32 %v1570_v23 }
 0x123   : > { %vm387_vm4 = vmor %vm385_vm3, %vm386_vm2 }
 0x124   : > { %v381_v25 = vmul.f32 %v1570_v23, %v380_v24 }
 0x126   : > { %v382_v26 = vmul.f32 0.5, %v381_v25 }
 0x128   : > { %v383_v27 = vsub.f32 1.5, %v382_v26 }
 0x12a   : > { %v384_v28 = vmul.f32 %v1570_v23, %v383_v27 }
 0x12c   : > { %v388_v30 = vsel %vm387_vm4, %v1570_v23, %v384_v28 }
 0x12d   : > { %v389_v31 = vmul.f32 %v388_v30, %v372_v11 }
 0x12f   : > { %v391_v33 = vmul.f32 %v1559_v29, %v389_v31 }
 0x131   : > { %v1931_v34 = vadd.f32 %v1560_v32, %v391_v33 }
 0x133   : > { %v398_v35 = vpack.c.bf16 %v1931_v34, %v1931_v34 }
 0x135   : > { %1364 = vmatmul.msk.bf16.vlgmr.msra.gmra.mxu0 %vm360_vm0, %v398_v35 }
 0x1b2   : > { %v425_v37 = vpop.f32.mrf.mxu0 }
 0x1b3   : > { %v426_v38 = vadd.f32 %v1936_v36, %v425_v37 }
 0x1b5   : > { %v429_v39 = vpack.c.bf16 %v426_v38, %v426_v38 }
 0x1b7   : > { %431 = vrot.lane.b32.xlu1 %v429_v39, %s1772_s19  ;;  %v433_v40 = vunpack.c.l.b16 %v429_v39 }
 0x1b9   : > { %v434_v42 = vpack.c.b16 %v433_v40, %v433_v40 }
 0x1ba   : > { %v427_v41 = vpop.f32.mrf.mxu0 }
 0x1bf   : > { %435 = vrot.lane.b32.xlu1 %v434_v42, %s1773_s20 }
 0x229   : > { %v432_v43 = vpop.permute.xlu1 %431 }
 0x22a   : > { %v457_v44 = vunpack.c.l.b16 %v432_v43 }
 0x22c   : > { %v458_v45 = vpack.c.b16 %v457_v44, %v457_v44  ;;  %v1372_v44 = vld [vmem:[%s2175_s4 + $0x4] sm:$0xf] }
 0x22e   : > { %459 = vrot.lane.b32.xlu2 %v458_v45, %s1773_s20 }
 0x231   : > { %v436_v46 = vpop.permute.xlu1 %435 }
 0x232   : > { %v442_v47 = vsel %vm437_vm5, %v436_v46, 0 }
 0x233   : > { %451 = vmatpush.bf16.xpose.msra.mxu1 %v442_v47 }
 0x23a   : > { %1365 = vmatmul.msk.bf16.vlgmr.msra.gmra.mxu1 %vm437_vm5, %v429_v39 }
 0x288   : > { %v460_v48 = vpop.permute.xlu2 %459 }
 0x289   : > { %v465_v49 = vsel %vm437_vm5, %v460_v48, 0 }
 0x28a   : > { %474 = vmatpush.bf16.xpose.msra.mxu2 %v465_v49 }
 0x291   : > { %1366 = vmatmul.msk.bf16.vlgmr.msra.gmra.mxu2 %vm437_vm5, %v432_v43 }
 0x2b7   : > { %v453_v51 = vpop.f32.mrf.mxu1 }
 0x2b8   : > { %v480_v52 = vmul.f32 0.25, %v453_v51 }
 0x2ba   : > { %v485_v53 = vadd.f32 %v1951_v50, %v480_v52 }
 0x2bc   : > { %v488_v54 = vsel %vm487_vm6, %v485_v53, -inf }
 0x2bd   : > { %489 = vmax.xlane.f32.xlu2 %v488_v54 }
 0x2bf   : > { %v455_v55 = vpop.f32.mrf.mxu1 }
 0x2d5   : > { %534 = vrot.lane.b32.xlu2 %v458_v45, %s1774_s24  ;;  %v1471_v45 = vld [vmem:[%s2175_s4 + $0x8] sm:$0xf0] }
 0x2d6   : > { %v1373_v46 = vor.u32 %v1471_v45, %v1372_v44 }
 0x314   : > { %v476_v56 = vpop.f32.mrf.mxu2 }
 0x315   : > { %v481_v57 = vmul.f32 0.25, %v476_v56 }
 0x317   : > { %v486_v58 = vadd.f32 %v1951_v50, %v481_v57 }
 0x319   : > { %v491_v59 = vsel %vm487_vm6, %v486_v58, -inf }
 0x31a   : > { %492 = vmax.xlane.f32.xlu0 %v491_v59 }
 0x31c   : > { %v478_v60 = vpop.f32.mrf.mxu2 }
 0x32e   : > { %512 = vrot.lane.b32.xlu0 %v434_v42, %s1774_s24  ;;  %v1472_v42 = vld [vmem:[%s2175_s4 + $0x18] sm:$0xf0] }
 0x330   : > { %v490_v61 = vpop.xlane.xlu2 %489 }
 0x331   : > { %v494_v62 = vsub.f32 %v485_v53, %v490_v61 }
 0x333   : > { %v496_v63 = vmul.f32 1.442695, %v494_v62 }
 0x335   : > { %1571 = vpow2.f32 %v496_v63 }
 0x338   : > { %v535_v7 = vpop.permute.xlu2 %534 }
 0x339   : > { %v540_v11 = vsel %vm517_vm7, %v535_v7, 0  ;;  %v1476_v7 = vld [vmem:[%s2176_s5 + $0x18] sm:$0xff] }
 0x33a   : > { %737 = vmatpush.bf16.msrb.mxu2 %v1476_v7 }
 0x33b   : > { %v1572_v0 = vpop.eup %1571 }
 0x33c   : > { %v500_v1 = vsel %vm487_vm6, %v1572_v0, 0.0 }
 0x33d   : > { %501 = vadd.xlane.f32.xlu1 %v500_v1 }
 0x356   : > { %563 = vrot.lane.b32.xlu1 %v1918_v16, %s1775_s12 }
 0x35e   : > { %568 = vrot.lane.b32.xlu1 %v1936_v36, %s1775_s12 }
 0x38d   : > { %v493_v2 = vpop.xlane.xlu0 %492 }
 0x38e   : > { %v495_v3 = vsub.f32 %v486_v58, %v493_v2 }
 0x390   : > { %v498_v4 = vmul.f32 1.442695, %v495_v3 }
 0x392   : > { %1573 = vpow2.f32 %v498_v4 }
 0x398   : > { %v1574_v5 = vpop.eup %1573 }
 0x399   : > { %v503_v6 = vsel %vm487_vm6, %v1574_v5, 0.0 }
 0x39a   : > { %504 = vadd.xlane.f32.xlu0 %v503_v6 }
 0x3a0   : > { %v513_v9 = vpop.permute.xlu0 %512 }
 0x3a1   : > { %v519_v10 = vsel %vm517_vm7, %v513_v9, 0  ;;  %v1475_v9 = vld [vmem:[%s2176_s5 + $0x10] sm:$0xff] }
 0x3a2   : > { %528 = vmatpush.bf16.msra.mxu3 %v519_v10  ;;  %738 = vmatpush.bf16.msrb.mxu2 %v1475_v9 }
 0x3a6   : > { %549 = vmatpush.bf16.msrb.mxu3 %v540_v11 }
 0x3b0   : > { %v502_v12 = vpop.xlane.xlu1 %501 }
 0x3b1   : > { %1575 = vrcp.f32 %v502_v12  ;;  %v1474_v12 = vld [vmem:[%s2176_s5 + $0x8] sm:$0xff] }
 0x3b2   : > { %739 = vmatpush.bf16.msrb.mxu2 %v1474_v12 }
 0x3b7   : > { %v1576_v13 = vpop.eup %1575 }
 0x3b8   : > { %v508_v14 = vmul.f32 %v1576_v13, %v1572_v0 }
 0x3ba   : > { %v510_v15 = vpack.c.bf16 %v508_v14, %v508_v14 }
 0x3bc   : > { %1367 = vmatmul.msk.bf16.vlgmr.msra.gmra.mxu3 %vm487_vm6, %v510_v15 }
 0x3c8   : > { %v564_v16 = vpop.permute.xlu1 %563 }
 0x3c9   : > { %580 = vmatpush.bf16.msrb.mxu0 %v564_v16 }
 0x3d0   : > { %v569_v30 = vpop.permute.xlu1 %568 }
 0x40d   : > { %v505_v17 = vpop.xlane.xlu0 %504 }
 0x40e   : > { %1577 = vrcp.f32 %v505_v17 }
 0x414   : > { %v1578_v18 = vpop.eup %1577 }
 0x415   : > { %v509_v20 = vmul.f32 %v1578_v18, %v1574_v5  ;;  %v1473_v18 = vld [vmem:[%s2176_s5] sm:$0xff] }
 0x416   : > { %740 = vmatpush.bf16.msrb.mxu2 %v1473_v18 }
 0x417   : > { %v511_v21 = vpack.c.bf16 %v509_v20, %v509_v20 }
 0x419   : > { %1368 = vmatmul.msk.bf16.vlgmr.msrb.gmra.mxu3 %vm487_vm6, %v511_v21 }
 0x43f   : > { %v530_v22 = vpop.f32.mrf.mxu3 }
 0x447   : > { %v532_v23 = vpop.f32.mrf.mxu3 }
 0x49c   : > { %v551_v24 = vpop.f32.mrf.mxu3 }
 0x49d   : > { %556 = vrot.lane.b32.xlu2 %v551_v24, %s1776_s22 }
 0x4a4   : > { %v553_v25 = vpop.f32.mrf.mxu3 }
 0x4a5   : > { %561 = vrot.lane.b32.xlu2 %v1927_v19, %s1775_s12  ;;  %v1562_v19 = vld [vmem:[#allocation5 + $0x2] ss:$0 sm:$0xff]  ;;  %v1563_v25 = vld [vmem:[#allocation5 + $0x4] ss:$0 sm:$0xff] }
 0x4a6   : > { %614 = vrot.lane.b32.xlu1 %v1562_v19, %s1773_s20 }
 0x4f7   : > { %v557_v26 = vpop.permute.xlu2 %556 }
 0x4f8   : > { %v559_v27 = vsel %vm437_vm5, %v530_v22, %v557_v26 }
 0x4f9   : > { %v560_v29 = vpack.c.bf16 %v559_v27, %v559_v27 }
 0x4ff   : > { %v562_v28 = vpop.permute.xlu2 %561 }
 0x500   : > { %581 = vmatpush.bf16.msrb.mxu0 %v562_v28 }
 0x503   : > { %1369 = vmatmul.msk.bf16.vlgmr.msrb.gmra.mxu0 %vm360_vm0, %v560_v29 }
 0x518   : > { %v615_v59 = vpop.permute.xlu1 %614 }
 0x580   : > { %v583_v31 = vpop.f32.mrf.mxu0 }
 0x581   : > { %v584_v32 = vadd.f32 %v583_v31, %v569_v30 }
 0x583   : > { %v587_v33 = vadd.f32 %v584_v32, %v1931_v34  ;;  %v1376_v34 = vld [vmem:[%s2175_s4 + $0x14] sm:$0xf] }
 0x584   : > { %v1377_v43 = vor.u32 %v1472_v42, %v1376_v34 }
 0x585   : > { %v589_v35 = vsel %vm360_vm0, %v587_v33, 0.0 }
 0x586   : > { %590 = vadd.xlane.f32.xlu0 %v589_v35  ;;  %647 = vmatpush.bf16.msrb.mxu1 %v1377_v43 }
 0x588   : > { %v585_v36 = vpop.f32.mrf.mxu0 }
 0x58a   : > { %648 = vmatpush.bf16.msrb.mxu1 %v1373_v46 }
 0x59a   : > { %635 = vrot.lane.b32.xlu0 %v1562_v19, %s1774_s24 }
 0x5f9   : > { %v591_v37 = vpop.xlane.xlu0 %590 }
 0x5fa   : > { %v592_v38 = vmul.f32 %v591_v37, %v1908_v8 }
 0x5fc   : > { %v593_v39 = vsub.f32 %v587_v33, %v592_v38 }
 0x5fe   : > { %v594_v40 = vmul.f32 %v593_v39, %v593_v39 }
 0x600   : > { %v595_v41 = vsel %vm360_vm0, %v594_v40, 0.0 }
 0x601   : > { %596 = vadd.xlane.f32.xlu2 %v595_v41 }
 0x60c   : > { %v636_v63 = vpop.permute.xlu0 %635 }
 0x619   : > { %770 = vrot.lane.b32.xlu2 %v1563_v25, %s1773_s20 }
 0x674   : > { %v597_v47 = vpop.xlane.xlu2 %596 }
 0x675   : > { %v598_v48 = vmul.f32 %v597_v47, %v1908_v8 }
 0x677   : > { %v599_v49 = vadd.f32 1e-12, %v598_v48 }
 0x679   : > { %1579 = vrsqrt.f32 %v599_v49  ;;  %vm606_vm9 = vweird.f32 %v599_v49 }
 0x67f   : > { %v1580_v51 = vpop.eup %1579 }
 0x680   : > { %v601_v52 = vmul.f32 %v1580_v51, %v599_v49  ;;  %vm607_vm8 = vweird.f32 %v1580_v51 }
 0x681   : > { %vm608_vm10 = vmor %vm606_vm9, %vm607_vm8 }
 0x682   : > { %v602_v53 = vmul.f32 %v1580_v51, %v601_v52 }
 0x684   : > { %v603_v54 = vmul.f32 0.5, %v602_v53 }
 0x686   : > { %v604_v55 = vsub.f32 1.5, %v603_v54 }
 0x688   : > { %v605_v56 = vmul.f32 %v1580_v51, %v604_v55  ;;  %v1408_v55 = vld [vmem:[%s2175_s4 + $0x30] sm:$0xf] }
 0x68a   : > { %v609_v57 = vsel %vm608_vm10, %v1580_v51, %v605_v56  ;;  %v1478_v56 = vld [vmem:[%s2175_s4 + $0x34] sm:$0xf0] }
 0x68b   : > { %v610_v58 = vmul.f32 %v609_v57, %v593_v39  ;;  %v2023_v57 = vor.u32 %v1478_v56, %v1408_v55 }
 0x68d   : > { %v612_v60 = vmul.f32 %v1562_v19, %v610_v58  ;;  %807 = vmatpush.bf16.msra.mxu3 %v2023_v57  ;;  %v1404_v58 = vld [vmem:[%s2175_s4 + $0x20] sm:$0xf] }
 0x68f   : > { %v1993_v61 = vadd.f32 %v615_v59, %v612_v60  ;;  %v1477_v59 = vld [vmem:[%s2175_s4 + $0x24] sm:$0xf0] }
 0x690   : > { %v2032_v60 = vor.u32 %v1477_v59, %v1404_v58 }
 0x691   : > { %v622_v62 = vpack.c.bf16 %v1993_v61, %v1993_v61 }
 0x692   : > { %808 = vmatpush.bf16.msra.mxu3 %v2032_v60 }
 0x693   : > { %1378 = vmatmul.msk.bf16.vlgmr.msrb.gmra.mxu1 %vm360_vm0, %v622_v62 }
 0x710   : > { %v650_v0 = vpop.f32.mrf.mxu1 }
 0x711   : > { %v651_v1 = vadd.f32 %v650_v0, %v636_v63 }
 0x713   : > { %v655_v2 = vmul.f32 0.70710677, %v651_v1  ;;  %v654_v41 = vmul.f32 0.5, %v651_v1 }
 0x715   : > { %v656_v3 = vand.u32 2147483647, %v655_v2  ;;  %v683_v24 = vsub.f32 0.0, %v655_v2  ;;  %vm689_vm15 = vcmp.ge.f32.partialorder %v655_v2, 0.0 }
 0x717   : > { %v657_v4 = vmul.f32 0.3275911, %v656_v3  ;;  %v684_v27 = vmul.f32 %v683_v24, %v655_v2 }
 0x718   : > { %v652_v5 = vpop.f32.mrf.mxu1 }
 0x719   : > { %v658_v6 = vadd.f32 1.0, %v657_v4  ;;  %v685_v30 = vmul.f32 1.442695, %v684_v27 }
 0x71b   : > { %1581 = vrcp.f32 %v658_v6  ;;  %v670_v14 = vand.u32 2147483648, %v658_v6  ;;  %v668_v17 = vand.u32 2147483647, %v658_v6  ;;  %vm664_vm12 = vweird.f32 %v658_v6 }
 0x71c   : > { %1583 = vpow2.f32 %v685_v30 }
 0x71d   : > { %v671_v21 = vor.u32 1.1754944e-38, %v670_v14  ;;  %vm669_vm14 = vcmp.eq.f32.partialorder %v668_v17, 8.507059e+37  ;;  %v2041_v14 = vld [vmem:[#allocation5 + $0x1] ss:$0 sm:$0xff] }
 0x721   : > { %v1582_v10 = vpop.eup %1581 }
 0x722   : > { %v660_v11 = vmul.f32 %v1582_v10, %v658_v6  ;;  %vm665_vm11 = vweird.f32 %v1582_v10  ;;  %v1584_v19 = vpop.eup %1583  ;;  %v771_v6 = vpop.permute.xlu2 %770 }
 0x723   : > { %vm666_vm13 = vmor %vm664_vm12, %vm665_vm11 }
 0x724   : > { %v661_v13 = vsub.f32 1.0, %v660_v11 }
 0x726   : > { %v662_v15 = vmul.f32 %v1582_v10, %v661_v13 }
 0x728   : > { %v663_v20 = vadd.f32 %v1582_v10, %v662_v15 }
 0x72a   : > { %v667_v22 = vsel %vm666_vm13, %v1582_v10, %v663_v20 }
 0x72b   : > { %v672_v23 = vsel %vm669_vm14, %v671_v21, %v667_v22 }
 0x72c   : > { %v674_v16 = vmul.f32 1.0614054, %v672_v23 }
 0x72e   : > { %v1379_v26 = vadd.f32 -1.4531521, %v674_v16 }
 0x730   : > { %v676_v28 = vmul.f32 %v1379_v26, %v672_v23 }
 0x732   : > { %v677_v29 = vadd.f32 1.4214138, %v676_v28 }
 0x734   : > { %v678_v31 = vmul.f32 %v677_v29, %v672_v23 }
 0x736   : > { %v1380_v32 = vadd.f32 -0.28449672, %v678_v31 }
 0x738   : > { %v680_v33 = vmul.f32 %v1380_v32, %v672_v23 }
 0x73a   : > { %v681_v35 = vadd.f32 0.2548296, %v680_v33 }
 0x73c   : > { %v682_v36 = vmul.f32 %v681_v35, %v672_v23 }
 0x73e   : > { %v687_v37 = vmul.f32 %v1584_v19, %v682_v36 }
 0x740   : > { %v688_v38 = vsub.f32 1.0, %v687_v37 }
 0x742   : > { %v690_v39 = vsub.f32 0.0, %v688_v38 }
 0x744   : > { %v691_v40 = vsel %vm689_vm15, %v688_v38, %v690_v39 }
 0x745   : > { %v692_v34 = vadd.f32 1.0, %v691_v40 }
 0x747   : > { %v693_v42 = vmul.f32 %v692_v34, %v654_v41 }
 0x749   : > { %v702_v43 = vpack.c.bf16 %v693_v42, %v693_v42 }
 0x74b   : > { %1397 = vmatmul.msk.bf16.vlgmr.msrb.gmra.mxu2 %vm729_vm1, %v702_v43 }
 0x7ce   : > { %v742_v44 = vpop.f32.mrf.mxu2 }
 0x7cf   : > { %v743_v45 = vadd.f32 %v1563_v25, %v742_v44 }
 0x7d1   : > { %v746_v46 = vadd.f32 %v743_v45, %v1993_v61 }
 0x7d3   : > { %v747_v47 = vsel %vm360_vm0, %v746_v46, 0.0 }
 0x7d4   : > { %748 = vadd.xlane.f32.xlu1 %v747_v47 }
 0x7d6   : > { %v744_v48 = vpop.f32.mrf.mxu2 }
 0x7ed   : > { %774 = vrot.lane.b32.xlu1 %v1563_v25, %s1774_s24 }
 0x847   : > { %v749_v49 = vpop.xlane.xlu1 %748 }
 0x848   : > { %v750_v51 = vmul.f32 %v749_v49, %v1908_v8 }
 0x84a   : > { %v751_v52 = vsub.f32 %v746_v46, %v750_v51 }
 0x84c   : > { %v752_v53 = vmul.f32 %v751_v52, %v751_v52 }
 0x84e   : > { %v753_v54 = vsel %vm360_vm0, %v752_v53, 0.0 }
 0x84f   : > { %754 = vadd.xlane.f32.xlu0 %v753_v54 }
 0x85f   : > { %v775_v10 = vpop.permute.xlu1 %774 }
 0x8c2   : > { %v755_v61 = vpop.xlane.xlu0 %754 }
 0x8c3   : > { %v756_v62 = vmul.f32 %v755_v61, %v1908_v8 }
 0x8c5   : > { %v757_v63 = vadd.f32 1e-12, %v756_v62 }
 0x8c7   : > { %1585 = vrsqrt.f32 %v757_v63  ;;  %vm764_vm3 = vweird.f32 %v757_v63 }
 0x8cd   : > { %v1586_v0 = vpop.eup %1585 }
 0x8ce   : > { %v759_v1 = vmul.f32 %v1586_v0, %v757_v63  ;;  %vm765_vm2 = vweird.f32 %v1586_v0 }
 0x8cf   : > { %vm766_vm4 = vmor %vm764_vm3, %vm765_vm2 }
 0x8d0   : > { %v760_v2 = vmul.f32 %v1586_v0, %v759_v1 }
 0x8d2   : > { %v761_v3 = vmul.f32 0.5, %v760_v2 }
 0x8d4   : > { %v762_v4 = vsub.f32 1.5, %v761_v3 }
 0x8d6   : > { %v763_v5 = vmul.f32 %v1586_v0, %v762_v4 }
 0x8d8   : > { %v767_v7 = vsel %vm766_vm4, %v1586_v0, %v763_v5 }
 0x8d9   : > { %v768_v9 = vmul.f32 %v767_v7, %v751_v52 }
 0x8db   : > { %v773_v11 = vmul.f32 %v771_v6, %v768_v9 }
 0x8dd   : > { %v2036_v12 = vadd.f32 %v775_v10, %v773_v11 }
 0x8df   : > { %v783_v13 = vpack.c.bf16 %v2036_v12, %v2036_v12 }
 0x8e1   : > { %1410 = vmatmul.msk.bf16.vlgmr.msra.gmra.mxu3 %vm360_vm0, %v783_v13  ;;  %v1565_v13 = vld [vmem:[#allocation5 + $0x3] ss:$0 sm:$0xff] }
 0x964   : > { %v810_v15 = vpop.f32.mrf.mxu3 }
 0x965   : > { %v811_v17 = vadd.f32 %v2041_v14, %v810_v15 }
 0x967   : > { %v814_v18 = vpack.c.bf16 %v811_v17, %v811_v17 }
 0x969   : > { %816 = vrot.lane.b32.xlu2 %v814_v18, %s1772_s19  ;;  %v818_v20 = vunpack.c.l.b16 %v814_v18 }
 0x96b   : > { %v819_v22 = vpack.c.b16 %v818_v20, %v818_v20 }
 0x96c   : > { %v812_v21 = vpop.f32.mrf.mxu3 }
 0x96d   : > { %v1480_v21 = vld [vmem:[%s2175_s4 + $0x38] sm:$0xf0] }
 0x971   : > { %820 = vrot.lane.b32.xlu2 %v819_v22, %s1773_s20 }
 0x9c3   : > { %v817_v23 = vpop.permute.xlu2 %816 }
 0x9c4   : > { %v841_v24 = vunpack.c.l.b16 %v817_v23 }
 0x9c6   : > { %v842_v25 = vpack.c.b16 %v841_v24, %v841_v24  ;;  %v1479_v24 = vld [vmem:[%s2175_s4 + $0x28] sm:$0xf0] }
 0x9c8   : > { %843 = vrot.lane.b32.xlu0 %v842_v25, %s1773_s20 }
 0x9cb   : > { %v821_v16 = vpop.permute.xlu2 %820 }
 0x9cc   : > { %v826_v26 = vsel %vm437_vm5, %v821_v16, 0 }
 0x9cd   : > { %835 = vmatpush.bf16.xpose.msra.mxu0 %v826_v26 }
 0x9d4   : > { %1411 = vmatmul.msk.bf16.vlgmr.msra.gmra.mxu0 %vm437_vm5, %v814_v18 }
 0xa3a   : > { %v844_v27 = vpop.permute.xlu0 %843 }
 0xa3b   : > { %v849_v28 = vsel %vm437_vm5, %v844_v27, 0 }
 0xa3c   : > { %858 = vmatpush.bf16.xpose.msra.mxu1 %v849_v28 }
 0xa43   : > { %1412 = vmatmul.msk.bf16.vlgmr.msra.gmra.mxu1 %vm437_vm5, %v817_v23  ;;  %v1422_v23 = vld [vmem:[%s2175_s4 + $0x24] sm:$0xf] }
 0xa51   : > { %v837_v29 = vpop.f32.mrf.mxu0 }
 0xa52   : > { %v864_v30 = vmul.f32 0.25, %v837_v29 }
 0xa54   : > { %v866_v31 = vadd.f32 %v1951_v50, %v864_v30 }
 0xa56   : > { %v868_v32 = vsel %vm487_vm6, %v866_v31, -inf }
 0xa57   : > { %869 = vmax.xlane.f32.xlu2 %v868_v32 }
 0xa59   : > { %v839_v33 = vpop.f32.mrf.mxu0 }
 0xac0   : > { %v860_v35 = vpop.f32.mrf.mxu1 }
 0xac1   : > { %v865_v36 = vmul.f32 0.25, %v860_v35 }
 0xac3   : > { %v867_v19 = vadd.f32 %v1951_v50, %v865_v36 }
 0xac5   : > { %v871_v37 = vsel %vm487_vm6, %v867_v19, -inf }
 0xac6   : > { %872 = vmax.xlane.f32.xlu1 %v871_v37 }
 0xac8   : > { %v862_v38 = vpop.f32.mrf.mxu1 }
 0xaca   : > { %v870_v39 = vpop.xlane.xlu2 %869 }
 0xacb   : > { %v874_v40 = vsub.f32 %v866_v31, %v870_v39 }
 0xacd   : > { %v876_v41 = vmul.f32 1.442695, %v874_v40 }
 0xacf   : > { %1587 = vpow2.f32 %v876_v41 }
 0xad5   : > { %v1588_v34 = vpop.eup %1587 }
 0xad6   : > { %v880_v42 = vsel %vm487_vm6, %v1588_v34, 0.0 }
 0xad7   : > { %881 = vadd.xlane.f32.xlu2 %v880_v42 }
 0xadf   : > { %913 = vrot.lane.b32.xlu1 %v842_v25, %s1774_s24  ;;  %v1423_v25 = vor.u32 %v1479_v24, %v1422_v23 }
 0xaef   : > { %942 = vrot.lane.b32.xlu2 %v2023_v57, %s1775_s12 }
 0xb39   : > { %v873_v43 = vpop.xlane.xlu1 %872 }
 0xb3a   : > { %v875_v44 = vsub.f32 %v867_v19, %v873_v43 }
 0xb3c   : > { %v878_v50 = vmul.f32 1.442695, %v875_v44 }
 0xb3e   : > { %1589 = vpow2.f32 %v878_v50 }
 0xb44   : > { %v1590_v45 = vpop.eup %1589 }
 0xb45   : > { %v883_v46 = vsel %vm487_vm6, %v1590_v45, 0.0 }
 0xb46   : > { %884 = vadd.xlane.f32.xlu0 %v883_v46  ;;  %v1484_v46 = vld [vmem:[%s2176_s5 + $0x38] sm:$0xff] }
 0xb4a   : > { %v882_v51 = vpop.xlane.xlu2 %881 }
 0xb51   : > { %v914_v47 = vpop.permute.xlu1 %913 }
 0xb52   : > { %v919_v48 = vsel %vm517_vm7, %v914_v47, 0  ;;  %v943_v61 = vpop.permute.xlu2 %942  ;;  %v1483_v47 = vld [vmem:[%s2176_s5 + $0x30] sm:$0xff] }
 0xb53   : > { %928 = vmatpush.bf16.msrb.mxu3 %v919_v48  ;;  %959 = vmatpush.bf16.msrb.mxu0 %v943_v61 }
 0xb5a   : > { %892 = vrot.lane.b32.xlu0 %v819_v22, %s1774_s24 }
 0xb62   : > { %940 = vrot.lane.b32.xlu0 %v2032_v60, %s1775_s12 }
 0xbb9   : > { %v885_v49 = vpop.xlane.xlu0 %884 }
 0xbba   : > { %1591 = vrcp.f32 %v885_v49 }
 0xbbb   : > { %1593 = vrcp.f32 %v882_v51  ;;  %v1482_v51 = vld [vmem:[%s2176_s5 + $0x28] sm:$0xff] }
 0xbc0   : > { %v1592_v52 = vpop.eup %1591 }
 0xbc1   : > { %v889_v53 = vmul.f32 %v1592_v52, %v1590_v45  ;;  %v1594_v55 = vpop.eup %1593 }
 0xbc2   : > { %v888_v56 = vmul.f32 %v1594_v55, %v1588_v34 }
 0xbc3   : > { %v891_v54 = vpack.c.bf16 %v889_v53, %v889_v53 }
 0xbc4   : > { %v890_v59 = vpack.c.bf16 %v888_v56, %v888_v56  ;;  %v1481_v56 = vld [vmem:[%s2176_s5 + $0x20] sm:$0xff] }
 0xbc5   : > { %1414 = vmatmul.msk.bf16.vlgmr.msrb.gmra.mxu3 %vm487_vm6, %v891_v54 }
 0xbcc   : > { %v893_v57 = vpop.permute.xlu0 %892 }
 0xbcd   : > { %v898_v58 = vsel %vm517_vm7, %v893_v57, 0 }
 0xbce   : > { %907 = vmatpush.bf16.msra.mxu2 %v898_v58 }
 0xbd1   : > { %1413 = vmatmul.msk.bf16.vlgmr.msra.gmra.mxu2 %vm487_vm6, %v890_v59 }
 0xbd2   : > { %1116 = vmatpush.bf16.msrb.mxu2 %v1484_v46 }
 0xbd4   : > { %v941_v1 = vpop.permute.xlu0 %940 }
 0xbd5   : > { %960 = vmatpush.bf16.msrb.mxu0 %v941_v1 }
 0xbd6   : > { %1117 = vmatpush.bf16.msrb.mxu2 %v1483_v47 }
 0xbda   : > { %1118 = vmatpush.bf16.msrb.mxu2 %v1482_v51 }
 0xbde   : > { %1119 = vmatpush.bf16.msrb.mxu2 %v1481_v56 }
 0xc48   : > { %v930_v60 = vpop.f32.mrf.mxu3 }
 0xc49   : > { %935 = vrot.lane.b32.xlu1 %v930_v60, %s1776_s22  ;;  %s1210_s22 = scalar_lea.hbm %s2178_s7, %s1466_s23 }
 0xc4a   : > { %s1214_s26 = sshll.u32 %s1210_s22, 4  ;;  %s1215_s26 = int_to_ptr.hbm [resolvable:$true] %s1214_s26 }
 0xc4b   : > { %s1679_s10 = sshra.s32 %s1215_s26, 4  ;;  %s1680_s10 = int_to_ptr.hbm [resolvable:$true] %s1679_s10 }
 0xc4c   : > { %s1681_s13 = scalar_lea.hbm %s1680_s10, 8  ;;  %p1686_p3 = scmp.lt.s32.totalorder %s1680_s10, %s2178_s7 }
 0xc4d   : > { %p1682_p0 = scmp.ne.s32.totalorder %s1680_s10, %s1681_s13  ;;  %p1687_p4 = scmp.lt.s32.totalorder %s1685_s0, %s1681_s13 }
 0xc4f   : > { %p1683_p1 = pnand %p1682_p0, %p1860_p5  ;;  %p1688_p7 = por %p1687_p4, %p1686_p3 }
 0xc50   : > { %v932_v62 = vpop.f32.mrf.mxu3 }
 0xc51   : > { %947 = vrot.lane.b32.xlu1 %v2041_v14, %s1775_s12  ;;  %v1566_v62 = vld [vmem:[#allocation5 + $0x5] ss:$0 sm:$0xff]  ;;  %p1684_p2 = pneg %p1683_p1 }
 0xc53   : > { %p1689_p8 = pnand %p1688_p7, %p1684_p2 }
 0xc54   : > { %v909_v63 = vpop.f32.mrf.mxu2 }
 0xc59   : > { %993 = vrot.lane.b32.xlu1 %v1565_v13, %s1773_s20 }
 0xc5c   : > { %v911_v0 = vpop.f32.mrf.mxu2 }
 0xc61   : > { %1014 = vrot.lane.b32.xlu1 %v1565_v13, %s1774_s24 }
 0xcbb   : > { %v936_v2 = vpop.permute.xlu1 %935 }
 0xcbc   : > { %v938_v3 = vsel %vm437_vm5, %v909_v63, %v936_v2 }
 0xcbd   : > { %v939_v4 = vpack.c.bf16 %v938_v3, %v938_v3 }
 0xcbf   : > { %1415 = vmatmul.msk.bf16.vlgmr.msrb.gmra.mxu0 %vm360_vm0, %v939_v4 }
 0xcc3   : > { %v948_v5 = vpop.permute.xlu1 %947 }
 0xccb   : > { %v994_v19 = vpop.permute.xlu1 %993 }
 0xcd3   : > { %v1015_v40 = vpop.permute.xlu1 %1014 }
 0xd3c   : > { %v962_v6 = vpop.f32.mrf.mxu0 }
 0xd3d   : > { %v963_v7 = vadd.f32 %v962_v6, %v948_v5 }
 0xd3f   : > { %v966_v9 = vadd.f32 %v963_v7, %v2036_v12  ;;  %v1426_v12 = vld [vmem:[%s2175_s4 + $0x34] sm:$0xf] }
 0xd40   : > { %v1427_v22 = vor.u32 %v1480_v21, %v1426_v12 }
 0xd41   : > { %v968_v10 = vsel %vm360_vm0, %v966_v9, 0.0 }
 0xd42   : > { %969 = vadd.xlane.f32.xlu2 %v968_v10  ;;  %1026 = vmatpush.bf16.msrb.mxu1 %v1427_v22 }
 0xd44   : > { %v964_v11 = vpop.f32.mrf.mxu0 }
 0xd46   : > { %1027 = vmatpush.bf16.msrb.mxu1 %v1423_v25 }
 0xdb5   : > { %v970_v14 = vpop.xlane.xlu2 %969 }
 0xdb6   : > { %v971_v15 = vmul.f32 %v970_v14, %v1908_v8 }
 0xdb8   : > { %v972_v17 = vsub.f32 %v966_v9, %v971_v15 }
 0xdba   : > { %v973_v18 = vmul.f32 %v972_v17, %v972_v17 }
 0xdbc   : > { %v974_v20 = vsel %vm360_vm0, %v973_v18, 0.0 }
 0xdbd   : > { %975 = vadd.xlane.f32.xlu0 %v974_v20 }
 0xdd1   : > { %1149 = vrot.lane.b32.xlu0 %v1566_v62, %s1773_s20 }
 0xe30   : > { %v976_v16 = vpop.xlane.xlu0 %975 }
 0xe31   : > { %v977_v26 = vmul.f32 %v976_v16, %v1908_v8 }
 0xe33   : > { %v978_v27 = vadd.f32 1e-12, %v977_v26 }
 0xe35   : > { %1595 = vrsqrt.f32 %v978_v27  ;;  %vm985_vm6 = vweird.f32 %v978_v27 }
 0xe3b   : > { %v1596_v28 = vpop.eup %1595 }
 0xe3c   : > { %v980_v29 = vmul.f32 %v1596_v28, %v978_v27  ;;  %vm986_vm5 = vweird.f32 %v1596_v28 }
 0xe3d   : > { %vm987_vm7 = vmor %vm985_vm6, %vm986_vm5 }
 0xe3e   : > { %v981_v30 = vmul.f32 %v1596_v28, %v980_v29 }
 0xe40   : > { %v982_v31 = vmul.f32 0.5, %v981_v30 }
 0xe42   : > { %v983_v32 = vsub.f32 1.5, %v982_v31  ;;  %v1486_v31 = vld [vmem:[%s2177_s6 + $0x8] sm:$0xff] }
 0xe43   : > { %1185 = vmatpush.bf16.msra.mxu3 %v1486_v31 }
 0xe44   : > { %v984_v33 = vmul.f32 %v1596_v28, %v983_v32  ;;  %v1485_v32 = vld [vmem:[%s2177_s6] sm:$0xff] }
 0xe46   : > { %v988_v35 = vsel %vm987_vm7, %v1596_v28, %v984_v33 }
 0xe47   : > { %v989_v36 = vmul.f32 %v988_v35, %v972_v17  ;;  %1186 = vmatpush.bf16.msra.mxu3 %v1485_v32 }
 0xe49   : > { %v991_v37 = vmul.f32 %v1565_v13, %v989_v36 }
 0xe4b   : > { %v996_v38 = vadd.f32 %v994_v19, %v991_v37 }
 0xe4d   : > { %v1001_v39 = vpack.c.bf16 %v996_v38, %v996_v38 }
 0xe4f   : > { %1428 = vmatmul.msk.bf16.vlgmr.msrb.gmra.mxu1 %vm360_vm0, %v1001_v39 }
 0xecc   : > { %v1029_v41 = vpop.f32.mrf.mxu1 }
 0xecd   : > { %v1030_v34 = vadd.f32 %v1029_v41, %v1015_v40 }
 0xecf   : > { %v1034_v42 = vmul.f32 0.70710677, %v1030_v34  ;;  %v1033_v18 = vmul.f32 0.5, %v1030_v34 }
 0xed1   : > { %v1035_v43 = vand.u32 2147483647, %v1034_v42  ;;  %v1062_v60 = vsub.f32 0.0, %v1034_v42  ;;  %vm1068_vm12 = vcmp.ge.f32.partialorder %v1034_v42, 0.0 }
 0xed3   : > { %v1036_v44 = vmul.f32 0.3275911, %v1035_v43  ;;  %v1063_v1 = vmul.f32 %v1062_v60, %v1034_v42  ;;  %v1150_v42 = vpop.permute.xlu0 %1149 }
 0xed4   : > { %v1031_v50 = vpop.f32.mrf.mxu1 }
 0xed5   : > { %v1037_v45 = vadd.f32 1.0, %v1036_v44  ;;  %v1064_v4 = vmul.f32 1.442695, %v1063_v1 }
 0xed7   : > { %1597 = vrcp.f32 %v1037_v45  ;;  %v1049_v53 = vand.u32 2147483648, %v1037_v45  ;;  %v1047_v55 = vand.u32 2147483647, %v1037_v45  ;;  %vm1043_vm9 = vweird.f32 %v1037_v45 }
 0xed8   : > { %1599 = vpow2.f32 %v1064_v4 }
 0xed9   : > { %v1050_v58 = vor.u32 1.1754944e-38, %v1049_v53  ;;  %vm1048_vm11 = vcmp.eq.f32.partialorder %v1047_v55, 8.507059e+37 }
 0xedd   : > { %v1598_v48 = vpop.eup %1597 }
 0xede   : > { %v1039_v49 = vmul.f32 %v1598_v48, %v1037_v45  ;;  %vm1044_vm8 = vweird.f32 %v1598_v48  ;;  %v1600_v11 = vpop.eup %1599 }
 0xedf   : > { %vm1045_vm10 = vmor %vm1043_vm9, %vm1044_vm8 }
 0xee0   : > { %v1040_v52 = vsub.f32 1.0, %v1039_v49 }
 0xee2   : > { %v1041_v54 = vmul.f32 %v1598_v48, %v1040_v52 }
 0xee4   : > { %v1042_v57 = vadd.f32 %v1598_v48, %v1041_v54 }
 0xee6   : > { %v1046_v59 = vsel %vm1045_vm10, %v1598_v48, %v1042_v57 }
 0xee7   : > { %v1051_v61 = vsel %vm1048_vm11, %v1050_v58, %v1046_v59 }
 0xee8   : > { %v1053_v63 = vmul.f32 1.0614054, %v1051_v61 }
 0xeea   : > { %v1429_v0 = vadd.f32 -1.4531521, %v1053_v63 }
 0xeec   : > { %v1055_v2 = vmul.f32 %v1429_v0, %v1051_v61 }
 0xeee   : > { %v1056_v3 = vadd.f32 1.4214138, %v1055_v2 }
 0xef0   : > { %v1057_v5 = vmul.f32 %v1056_v3, %v1051_v61 }
 0xef2   : > { %v1430_v6 = vadd.f32 -0.28449672, %v1057_v5 }
 0xef4   : > { %v1059_v7 = vmul.f32 %v1430_v6, %v1051_v61 }
 0xef6   : > { %v1060_v9 = vadd.f32 0.2548296, %v1059_v7 }
 0xef8   : > { %v1061_v10 = vmul.f32 %v1060_v9, %v1051_v61 }
 0xefa   : > { %v1066_v13 = vmul.f32 %v1600_v11, %v1061_v10 }
 0xefc   : > { %v1067_v14 = vsub.f32 1.0, %v1066_v13 }
 0xefe   : > { %v1069_v15 = vsub.f32 0.0, %v1067_v14 }
 0xf00   : > { %v1070_v17 = vsel %vm1068_vm12, %v1067_v14, %v1069_v15 }
 0xf01   : > { %v1071_v20 = vadd.f32 1.0, %v1070_v17 }
 0xf03   : > { %v1072_v12 = vmul.f32 %v1071_v20, %v1033_v18 }
 0xf05   : > { %v1082_v21 = vpack.c.bf16 %v1072_v12, %v1072_v12 }
 0xf07   : > { %1455 = vmatmul.msk.bf16.vlgmr.msrb.gmra.mxu2 %vm729_vm1, %v1082_v21 }
 0xf8a   : > { %v1121_v22 = vpop.f32.mrf.mxu2 }
 0xf8b   : > { %v1122_v23 = vadd.f32 %v1566_v62, %v1121_v22 }
 0xf8d   : > { %v1125_v24 = vadd.f32 %v1122_v23, %v996_v38 }
 0xf8f   : > { %v1126_v25 = vsel %vm360_vm0, %v1125_v24, 0.0 }
 0xf90   : > { %1127 = vadd.xlane.f32.xlu1 %v1126_v25 }
 0xf92   : > { %v1123_v16 = vpop.f32.mrf.mxu2 }
0x1003   : > { %v1128_v26 = vpop.xlane.xlu1 %1127 }
0x1004   : > { %v1129_v27 = vmul.f32 %v1128_v26, %v1908_v8 }
0x1006   : > { %v1130_v28 = vsub.f32 %v1125_v24, %v1129_v27 }
0x1008   : > { %v1131_v29 = vmul.f32 %v1130_v28, %v1130_v28 }
0x100a   : > { %v1132_v30 = vsel %vm360_vm0, %v1131_v29, 0.0 }
0x100b   : > { %1133 = vadd.xlane.f32.xlu2 %v1132_v30 }
0x1023   : > { %1153 = vrot.lane.b32.xlu2 %v1566_v62, %s1774_s24  ;;  %s2118_s24 = sand.u32 1, %s1759_s28  }
0x1024   : > { %s1354_s18 = sshll.u32 %s2118_s24, 3  ;;  %s1196_s20 = scalar_lea.sflag [#allocation4], %s2118_s24 }
0x1025   : > { %s341_s21 = scalar_lea.vmem [#allocation7], %s1354_s18 }
0x1026   : > { %s1212_s25 = sshll.u32 %s341_s21, 4  ;;  %s1213_s25 = int_to_ptr.vmem [resolvable:$true] %s1212_s25 }
0x107e   : > { %v1134_v33 = vpop.xlane.xlu2 %1133 }
0x107f   : > { %v1135_v35 = vmul.f32 %v1134_v33, %v1908_v8 }
0x1081   : > { %v1136_v36 = vadd.f32 1e-12, %v1135_v35 }
0x1083   : > { %1601 = vrsqrt.f32 %v1136_v36  ;;  %vm1143_vm14 = vweird.f32 %v1136_v36 }
0x1086   : > { %v1154_v8 = vpop.permute.xlu2 %1153 }
0x1089   : > { %v1602_v19 = vpop.eup %1601 }
0x108a   : > { %v1138_v37 = vmul.f32 %v1602_v19, %v1136_v36  ;;  %vm1144_vm13 = vweird.f32 %v1602_v19 }
0x108b   : > { %vm1145_vm15 = vmor %vm1143_vm14, %vm1144_vm13 }
0x108c   : > { %v1139_v38 = vmul.f32 %v1602_v19, %v1138_v37 }
0x108e   : > { %v1140_v39 = vmul.f32 0.5, %v1139_v38 }
0x1090   : > { %v1141_v40 = vsub.f32 1.5, %v1140_v39 }
0x1092   : > { %v1142_v41 = vmul.f32 %v1602_v19, %v1141_v40 }
0x1094   : > { %v1146_v34 = vsel %vm1145_vm15, %v1602_v19, %v1142_v41 }
0x1095   : > { %v1147_v43 = vmul.f32 %v1146_v34, %v1130_v28 }
0x1097   : > { %v1152_v44 = vmul.f32 %v1150_v42, %v1147_v43 }
0x1099   : > { %v1156_v50 = vadd.f32 %v1154_v8, %v1152_v44 }
0x109b   : > { %v1162_v45 = vpack.c.bf16 %v1156_v50, %v1156_v50  ;;  %1157 = vst.msk [vmem:[%s341_s21] sm:$0xff] %vm360_vm0, %v1156_v50 }
0x109d   : > { %1464 = vmatmul.msk.bf16.vlgmr.msra.gmra.mxu3 %vm360_vm0, %v1162_v45 }
0x109e   : > { %1692 = shalt.err (!%p1689_p8)
}
0x109f   : > { %1495 = dma.vmem_to_hbm [thread:$0]  (%p1860_p5), %s1213_s25, 128, %s1215_s26, %s1196_s20   ;;  %v1163_v46 = vld [vmem:[#allocation2 + $0x2] sm:$0x1]  ;;  %vm1193_vm0 = vcmask 253952  }
0x10a0   : > { %s1223_s19 = scalar_lea.hbm %s2179_s8, %s1843_s9  ;;  %s347_s1 = scalar_lea.vmem [#allocation8], %s2118_s24 }
0x10a1   : > { %s1225_s0 = sshll.u32 %s347_s1, 4  ;;  %s1227_s2 = sshll.u32 %s1223_s19, 4  ;;  %s1226_s0 = int_to_ptr.vmem [resolvable:$true] %s1225_s0  ;;  %s1228_s2 = int_to_ptr.hbm [resolvable:$true] %s1227_s2 }
0x10a2   : > { %s1201_s12 = scalar_lea.sflag [#allocation9], %s2118_s24  ;;  %s1707_s22 = sshra.s32 %s1228_s2, 4  ;;  %s1708_s22 = int_to_ptr.hbm [resolvable:$true] %s1707_s22 }
0x10a3   : > { %s1709_s25 = scalar_lea.hbm %s1708_s22, 1  ;;  %s1713_s20 = scalar_lea.hbm %s2179_s8, 2 }
0x10a4   : > { %p1710_p9 = scmp.ne.s32.totalorder %s1708_s22, %s1709_s25  ;;  %p1714_p12 = scmp.lt.s32.totalorder %s1708_s22, %s2179_s8 }
0x10a5   : > { %p1715_p13 = scmp.lt.s32.totalorder %s1713_s20, %s1709_s25 }
0x10a6   : > { %p1711_p10 = pnand %p1710_p9, %p1860_p5 }
0x10a7   : > { %p1716_p0 = por %p1715_p13, %p1714_p12 }
0x10a8   : > { %p1712_p11 = pneg %p1711_p10 }
0x10aa   : > { %p1717_p1 = pnand %p1716_p0, %p1712_p11 }
0x1120   : > { %v1188_v47 = vpop.f32.mrf.mxu3 }
0x1121   : > { %v1189_v48 = vadd.f32 %v1188_v47, %v1163_v46 }
0x1123   : > { %1603 = vtanh.f32 %v1189_v48 }
0x1128   : > { %v1190_v49 = vpop.f32.mrf.mxu3 }
0x1129   : > { %v1604_v51 = vpop.eup %1603 }
0x112a   : > { %1194 = vst.msk [vmem:[%s347_s1] sm:$0x1] %vm1193_vm0, %v1604_v51 }
0x112b   : > { %1720 = shalt.err (!%p1717_p1)
}
0x112c   : > { %1496 = dma.vmem_to_hbm [thread:$0]  (%p1860_p5), %s1226_s0, 16, %s1228_s2, %s1201_s12  }
0x112d PF: > { %p1517_p2 = scmp.ge.s32.totalorder %s1767_s30, 2  ;;  %s1239_s24 = sand.u32 1, %s1755_s27  }
0x112e   : > { %s1240_s17 = scalar_lea.sflag [#allocation4], %s1239_s24 }
0x112f   : > { %p1507_p3 = pnand %p1517_p2, %p1864_p6 }
0x1131   : > { %p1508_p4 = pneg %p1507_p3 }
0x1133   : > { %1746 = dma.done.wait (%p1508_p4), %s1240_s17, 128  }
0x1134   : > { %1748 = vsyncadd (%p1508_p4), %s1240_s17, 4294967168  ;;  %s1250_s18 = scalar_lea.sflag [#allocation9], %s1239_s24 }
0x1135   : > { %1750 = dma.done.wait (%p1508_p4), %s1250_s18, 16  }
0x1136   : > { %1752 = vsyncadd (%p1508_p4), %s1250_s18, 4294967280  ;;  %p24_p5 = scmp.ge.s32.totalorder %s1847_s11, 4   ;;  %s2189_s27 = smov %s1759_s28 }
0x1137   : > { %s2190_s28 = smov %s1763_s29  ;;  %s2191_s29 = smov %s1858_s14 }
0x1138   : > { %s2192_s30 = smov %s1847_s11  ;;  %26 = sbr.rel (!%p24_p5) target bundleno = 11 (0xb), region = 114 }
0x113d   :  { %1255 = vsyncpa [#allocation3], 1 }
0x113e   :  { %1257 = vsyncpa [#allocation3 + $0x1], 1 }
0x113f   :  { %1258 = vsyncpa [#allocation6], 1 }
0x1140   :  { %1259 = vsyncpa [#allocation4], 1 }
0x1141   :  { %1261 = vsyncpa [#allocation4 + $0x1], 1 }
0x1142   :  { %1262 = vsyncpa [#allocation9], 1 }
0x1143   :  { %1264 = vsyncpa [#allocation9 + $0x1], 1 }

</bundles_post_ra>
